<compile_context>
chip_gen: v7x
topology: tpu7x:2x2x1
jax: 0.10.0
libtpu: 0.0.40
codegen_flags: <defaults>
</compile_context>

<pallas_src>
import jax
import jax.numpy as jnp
import numpy as np
from jax.experimental import pallas as pl
from jax.experimental.pallas import tpu as pltpu

CONF_THRESH = 0.65
NMS_THRESH = 0.55
NEG_INF = -1e30


# ----------------------------------------------------------------------------
# Kernel 1: per-box preprocessing on a (C, N) slab (boxes on lanes).
#   boxes rows: [x1, y1, x2, y2, p_obj, max_conf, cls_idx, valid]   -> (8, N)
#   score     : max_conf where valid else NEG_INF (for the argsort) -> (1, N)
# ----------------------------------------------------------------------------
def _preprocess_kernel(xt_ref, boxes_ref, score_ref):
    xt = xt_ref[...]                       # (C, N)
    c, n = xt.shape
    nc = c - 5

    xc = xt[0:1, :]
    yc = xt[1:2, :]
    w = xt[2:3, :]
    h = xt[3:4, :]
    obj = xt[4:5, :]
    scores = xt[5:, :]                     # (nC, N), classes on sublanes

    # xywh -> xyxy (all (1, N) lane vectors)
    x1 = xc - w * 0.5
    y1 = yc - h * 0.5
    x2 = xc + w * 0.5
    y2 = yc + h * 0.5

    # max class score + first-occurrence argmax over the class (sublane) axis
    max_score = jnp.max(scores, axis=0, keepdims=True)            # (1, N)
    row_iota = jax.lax.broadcasted_iota(jnp.int32, scores.shape, 0)
    row_iota = jnp.where(scores == max_score, row_iota, nc)
    cls_idx = jnp.min(row_iota, axis=0, keepdims=True).astype(jnp.float32)

    # foreground filter: pred[:, 4] > conf_thresh (strict >, as in torch)
    valid = obj > CONF_THRESH
    validf = valid.astype(jnp.float32)

    # single sublane-stacked slab store (lane-dense)
    boxes_ref[...] = jnp.concatenate(
        [x1, y1, x2, y2, obj, max_score, cls_idx, validf], axis=0)   # (8, N)
    score_ref[...] = jnp.where(valid, max_score, NEG_INF)            # (1, N)


def preprocess(xt):
    bs, c, n = xt.shape
    return pl.pallas_call(
        _preprocess_kernel,
        out_shape=(jax.ShapeDtypeStruct((bs, 8, n), jnp.float32),
                   jax.ShapeDtypeStruct((bs, 1, n), jnp.float32)),
        grid=(bs,),
        in_specs=[pl.BlockSpec((None, c, n), lambda b: (b, 0, 0))],
        out_specs=(pl.BlockSpec((None, 8, n), lambda b: (b, 0, 0)),
                   pl.BlockSpec((None, 1, n), lambda b: (b, 0, 0))),
        compiler_params=pltpu.CompilerParams(
            dimension_semantics=("parallel",)),
    )(xt)


# ----------------------------------------------------------------------------
# Kernel 2: greedy NMS on confidence-sorted boxes.
#   bt_ref   : (8, N) row-oriented boxes, already sorted by descending conf
#   bc_ref   : (N, 8) column-oriented copy (for the pairwise broadcast only)
#   pred_ref : (8, N) rows [batch_idx, x1..y2, p_obj, max_conf, cls_idx]
#   keep_ref : (1, N) 1.0 if kept (same sorted order as bt_ref)
#   sup_ref  : (N, N) VMEM scratch — precomputed suppression matrix
# ----------------------------------------------------------------------------
def _nms_kernel(bt_ref, bc_ref, pred_ref, keep_ref, sup_ref):
    bt = bt_ref[...]                       # (8, N)
    n = bt.shape[1]

    x1r, y1r = bt[0:1, :], bt[1:2, :]
    x2r, y2r = bt[2:3, :], bt[3:4, :]
    clsr = bt[6:7, :]
    valid_b = bt[7:8, :] > 0.5             # (1, N) bool
    area_r = (x2r - x1r) * (y2r - y1r)     # (1, N)

    bc = bc_ref[...]                       # (N, 8)
    x1c, y1c = bc[:, 0:1], bc[:, 1:2]
    x2c, y2c = bc[:, 2:3], bc[:, 3:4]
    clsc = bc[:, 6:7]
    area_c = (x2c - x1c) * (y2c - y1c)     # (N, 1)

    # One-shot pairwise suppression matrix (hoisted out of the serial loop).
    # Division-free: iou >= thresh  <=>  inter >= thresh * union.
    ix1 = jnp.maximum(x1c, x1r)            # (N, N)
    iy1 = jnp.maximum(y1c, y1r)
    ix2 = jnp.minimum(x2c, x2r)
    iy2 = jnp.minimum(y2c, y2r)
    inter = jnp.maximum(ix2 - ix1, 0.0) * jnp.maximum(iy2 - iy1, 0.0)
    union = area_c + area_r - inter
    sup = (clsc == clsr) & (inter >= NMS_THRESH * union)
    sup_ref[...] = sup.astype(jnp.float32)

    lane = jax.lax.broadcasted_iota(jnp.int32, (1, n), 1)

    # Greedy sequential loop over rank r (already descending confidence):
    # one (1, N) row load from scratch + a single-vreg masked any-reduction.
    # The self-entry sup[r, r] is harmless because keep[r] is still 0 here.
    def body(r, keep):
        row = sup_ref[pl.ds(r, 1), :]                  # (1, N)
        suppressed = jnp.any((keep > 0.5) & (row > 0.5))
        keep_r = (valid_b & jnp.logical_not(suppressed)).astype(jnp.float32)
        return jnp.where(lane == r, keep_r, keep)

    keep = jax.lax.fori_loop(0, n, body, jnp.zeros((1, n), jnp.float32))

    bidx = jnp.zeros((1, n), jnp.float32) + pl.program_id(0).astype(jnp.float32)
    pred_ref[...] = jnp.concatenate([bidx, bt[0:7, :]], axis=0)   # (8, N)
    keep_ref[...] = keep                                          # (1, N)


def nms_suppress(boxes_t, boxes_c):
    bs, _, n = boxes_t.shape
    return pl.pallas_call(
        _nms_kernel,
        out_shape=(jax.ShapeDtypeStruct((bs, 8, n), jnp.float32),
                   jax.ShapeDtypeStruct((bs, 1, n), jnp.float32)),
        grid=(bs,),
        in_specs=[pl.BlockSpec((None, 8, n), lambda b: (b, 0, 0)),
                  pl.BlockSpec((None, n, 8), lambda b: (b, 0, 0))],
        out_specs=(pl.BlockSpec((None, 8, n), lambda b: (b, 0, 0)),
                   pl.BlockSpec((None, 1, n), lambda b: (b, 0, 0))),
        scratch_shapes=[pltpu.VMEM((n, n), jnp.float32)],
        compiler_params=pltpu.CompilerParams(
            dimension_semantics=("parallel",)),
    )(boxes_t, boxes_c)


# ----------------------------------------------------------------------------
# Full NMSLayer forward
# ----------------------------------------------------------------------------
def nms_layer(x):
    """x: [bs, num_bboxes, 5 + nC] float32 -> (preds [bs, N, 8], keep [bs, N])."""
    bs, n, c = x.shape
    # Put boxes on the lane axis (one XLA transpose; all kernel work lane-dense).
    xt = jnp.transpose(x, (0, 2, 1))                         # (bs, C, N)
    boxes_t, score = preprocess(xt)                          # (bs, 8, N), (bs, 1, N)
    # Per-batch descending-confidence order (invalid boxes sink to the end).
    order = jnp.argsort(-score[:, 0, :], axis=-1)            # (bs, N)
    # Gather boxes into sorted order in XLA so kernel 2's serial loop needs no
    # per-iteration SMEM indirection / dynamic row gather.
    idx = jnp.broadcast_to(order[:, None, :], boxes_t.shape)
    boxes_sorted_t = jnp.take_along_axis(boxes_t, idx, axis=2)      # (bs, 8, N)
    boxes_sorted_c = jnp.transpose(boxes_sorted_t, (0, 2, 1))       # (bs, N, 8)
    # NOTE: for production anchor counts (N in the 10k+ range), cap with
    # jax.lax.top_k on `score` before kernel 2 so the serial loop / N x N
    # scratch operate on K <= ~1-2k boxes per batch (keeps the K x K scratch
    # well inside v7x's 64 MiB VMEM).
    preds_t, keep_t = nms_suppress(boxes_sorted_t, boxes_sorted_c)
    preds = jnp.transpose(preds_t, (0, 2, 1))                # (bs, N, 8)
    keep = keep_t[:, 0, :]                                   # (bs, N)
    return preds, keep
    # TODO(synk): torch returns a dynamically-sized [num_kept, 8] tensor; that
    # compaction has no fixed-shape Pallas equivalent, so it is done outside
    # jit (see __main__) from the padded preds + keep mask.


if __name__ == "__main__":
    bs, num_bboxes, n_classes = 2, 128, 11     # feature dim = 5 + 11 = 16
    key = jax.random.PRNGKey(0)
    k1, k2, k3, k4 = jax.random.split(key, 4)
    xy = jax.random.uniform(k1, (bs, num_bboxes, 2), minval=0.0, maxval=16.0)
    wh = jax.random.uniform(k2, (bs, num_bboxes, 2), minval=1.0, maxval=8.0)
    obj = jax.random.uniform(k3, (bs, num_bboxes, 1))
    cls = jax.random.uniform(k4, (bs, num_bboxes, n_classes))
    x = jnp.concatenate([xy, wh, obj, cls], axis=-1).astype(jnp.float32)

    preds, keep = jax.jit(nms_layer)(x)
    jax.block_until_ready((preds, keep))

    # compact to the torch-style [num_kept, 8] output (outside jit)
    preds_np = np.asarray(preds)
    keep_np = np.asarray(keep) > 0.5
    dense = preds_np[keep_np]
    assert dense.ndim == 2 and dense.shape[1] == 8
    assert np.isfinite(dense).all()

    # Invariant 1: every kept row passed the objectness threshold.
    assert np.all(dense[:, 5] > CONF_THRESH)
    # Invariant 2: batch index column is correct.
    for b in range(bs):
        rows = preds_np[b][keep_np[b]]
        assert np.all(rows[:, 0] == float(b))
        # Invariant 3: kept same-class boxes within a batch have IoU < thresh.
        for i in range(rows.shape[0]):
            for j in range(i + 1, rows.shape[0]):
                if rows[i, 7] != rows[j, 7]:
                    continue
                xx1 = max(rows[i, 1], rows[j, 1])
                yy1 = max(rows[i, 2], rows[j, 2])
                xx2 = min(rows[i, 3], rows[j, 3])
                yy2 = min(rows[i, 4], rows[j, 4])
                inter = max(xx2 - xx1, 0.0) * max(yy2 - yy1, 0.0)
                a_i = (rows[i, 3] - rows[i, 1]) * (rows[i, 4] - rows[i, 2])
                a_j = (rows[j, 3] - rows[j, 1]) * (rows[j, 4] - rows[j, 2])
                iou = inter / (a_i + a_j - inter)
                assert iou < NMS_THRESH + 1e-4

    print("KERNEL_OK")
</pallas_src>

<mosaic_0001>
module attributes {stable_mosaic.version = 11 : i64} {
  func.func private @main(%arg0: i32) attributes {dimension_semantics = [#tpu.dimension_semantics<core_parallel>], iteration_bounds = array<i64: 2>, tpu.core_type = #tpu.core_type<sc_scalar_subcore>, window_params = []} {
    return
  }
}

module attributes {stable_mosaic.version = 11 : i64} {
  func.func private @main(%arg0: i32) attributes {dimension_semantics = [#tpu.dimension_semantics<core_parallel>], iteration_bounds = array<i64: 2>, tpu.core_type = #tpu.core_type<sc_scalar_subcore>, window_params = []} {
    return
  }
}

module attributes {stable_mosaic.version = 11 : i64} {
  func.func @_preprocess_kernel(%arg0: i32, %arg1: memref<1x16x128xf32, #tpu.memory_space<vmem>>, %arg2: memref<1x8x128xf32, #tpu.memory_space<vmem>>, %arg3: memref<1x1x128xf32, #tpu.memory_space<vmem>>) attributes {dimension_semantics = [#tpu.dimension_semantics<parallel>], iteration_bounds = array<i64: 2>, scalar_prefetch = 0 : i64, scratch_operands = 0 : i64, tpu.core_type = #tpu.core_type<tc>, window_params = [{transform_indices = @transform_0, window_bounds = array<i64: 1, 16, 128>}, {transform_indices = @transform_1, window_bounds = array<i64: 1, 8, 128>}, {transform_indices = @transform_2, window_bounds = array<i64: 1, 1, 128>}]} {
    %c0 = arith.constant 0 : index
    %c0_0 = arith.constant 0 : index
    %c0_1 = arith.constant 0 : index
    %0 = vector.load %arg1[%c0, %c0_0, %c0_1] : memref<1x16x128xf32, #tpu.memory_space<vmem>>, vector<1x16x128xf32>
    %1 = vector.shape_cast %0 : vector<1x16x128xf32> to vector<16x128xf32>
    %2 = vector.extract_strided_slice %1 {offsets = [0, 0], sizes = [1, 128], strides = [1, 1]} : vector<16x128xf32> to vector<1x128xf32>
    %3 = vector.extract_strided_slice %1 {offsets = [1, 0], sizes = [1, 128], strides = [1, 1]} : vector<16x128xf32> to vector<1x128xf32>
    %4 = vector.extract_strided_slice %1 {offsets = [2, 0], sizes = [1, 128], strides = [1, 1]} : vector<16x128xf32> to vector<1x128xf32>
    %5 = vector.extract_strided_slice %1 {offsets = [3, 0], sizes = [1, 128], strides = [1, 1]} : vector<16x128xf32> to vector<1x128xf32>
    %6 = vector.extract_strided_slice %1 {offsets = [4, 0], sizes = [1, 128], strides = [1, 1]} : vector<16x128xf32> to vector<1x128xf32>
    %7 = vector.extract_strided_slice %1 {offsets = [5, 0], sizes = [11, 128], strides = [1, 1]} : vector<16x128xf32> to vector<11x128xf32>
    %cst = arith.constant 5.000000e-01 : f32
    %8 = vector.broadcast %cst : f32 to vector<1x128xf32>
    %9 = arith.mulf %4, %8 : vector<1x128xf32>
    %10 = arith.subf %2, %9 : vector<1x128xf32>
    %cst_2 = arith.constant 5.000000e-01 : f32
    %11 = vector.broadcast %cst_2 : f32 to vector<1x128xf32>
    %12 = arith.mulf %5, %11 : vector<1x128xf32>
    %13 = arith.subf %3, %12 : vector<1x128xf32>
    %cst_3 = arith.constant 5.000000e-01 : f32
    %14 = vector.broadcast %cst_3 : f32 to vector<1x128xf32>
    %15 = arith.mulf %4, %14 : vector<1x128xf32>
    %16 = arith.addf %2, %15 : vector<1x128xf32>
    %cst_4 = arith.constant 5.000000e-01 : f32
    %17 = vector.broadcast %cst_4 : f32 to vector<1x128xf32>
    %18 = arith.mulf %5, %17 : vector<1x128xf32>
    %19 = arith.addf %3, %18 : vector<1x128xf32>
    %cst_5 = arith.constant dense<0xFF800000> : vector<128xf32>
    %20 = vector.multi_reduction <maximumf>, %7, %cst_5 [0] : vector<11x128xf32> to vector<128xf32>
    %21 = vector.shape_cast %20 : vector<128xf32> to vector<1x128xf32>
    %22 = tpu.iota {dimensions = array<i32: 0>} : vector<11x128xi32>
    %23 = vector.broadcast %21 : vector<1x128xf32> to vector<11x128xf32>
    %24 = arith.cmpf oeq, %7, %23 : vector<11x128xf32>
    %c11_i32 = arith.constant 11 : i32
    %25 = vector.broadcast %c11_i32 : i32 to vector<11x128xi32>
    %26 = arith.select %24, %22, %25 : vector<11x128xi1>, vector<11x128xi32>
    %cst_6 = arith.constant dense<2147483647> : vector<128xi32>
    %27 = vector.multi_reduction <minsi>, %26, %cst_6 [0] : vector<11x128xi32> to vector<128xi32>
    %28 = vector.shape_cast %27 : vector<128xi32> to vector<1x128xi32>
    %29 = arith.sitofp %28 : vector<1x128xi32> to vector<1x128xf32>
    %cst_7 = arith.constant 6.500000e-01 : f32
    %30 = vector.broadcast %cst_7 : f32 to vector<1x128xf32>
    %31 = arith.cmpf ogt, %6, %30 : vector<1x128xf32>
    %32 = arith.extui %31 : vector<1x128xi1> to vector<1x128xi32>
    %33 = arith.sitofp %32 : vector<1x128xi32> to vector<1x128xf32>
    %34 = tpu.concatenate %10, %13, %16, %19, %6, %21, %29, %33 in 0 : vector<1x128xf32>, vector<1x128xf32>, vector<1x128xf32>, vector<1x128xf32>, vector<1x128xf32>, vector<1x128xf32>, vector<1x128xf32>, vector<1x128xf32> -> vector<8x128xf32>
    %c0_8 = arith.constant 0 : index
    %c0_9 = arith.constant 0 : index
    %c0_10 = arith.constant 0 : index
    %35 = vector.load %arg2[%c0_8, %c0_9, %c0_10] : memref<1x8x128xf32, #tpu.memory_space<vmem>>, vector<1x8x128xf32>
    %36 = vector.shape_cast %35 : vector<1x8x128xf32> to vector<8x128xf32>
    %37 = vector.shape_cast %34 : vector<8x128xf32> to vector<1x8x128xf32>
    tpu.vector_store %arg2[%c0_8, %c0_9, %c0_10], %37 {strides = array<i32>} : memref<1x8x128xf32, #tpu.memory_space<vmem>>, vector<1x8x128xf32>,
    %cst_11 = arith.constant -1.000000e+30 : f32
    %38 = vector.broadcast %cst_11 : f32 to vector<1x128xf32>
    %39 = arith.select %31, %21, %38 : vector<1x128xi1>, vector<1x128xf32>
    %c0_12 = arith.constant 0 : index
    %c0_13 = arith.constant 0 : index
    %c0_14 = arith.constant 0 : index
    %40 = vector.load %arg3[%c0_12, %c0_13, %c0_14] : memref<1x1x128xf32, #tpu.memory_space<vmem>>, vector<1x1x128xf32>
    %41 = vector.shape_cast %40 : vector<1x1x128xf32> to vector<1x128xf32>
    %42 = vector.shape_cast %39 : vector<1x128xf32> to vector<1x1x128xf32>
    tpu.vector_store %arg3[%c0_12, %c0_13, %c0_14], %42 {strides = array<i32>} : memref<1x1x128xf32, #tpu.memory_space<vmem>>, vector<1x1x128xf32>,
    return
  }
  func.func @transform_0(%arg0: i32) -> (i32, i32, i32) {
    %c0_i32 = arith.constant 0 : i32
    %c0_i32_0 = arith.constant 0 : i32
    %c0_i32_1 = arith.constant 0 : i32
    return %arg0, %c0_i32, %c0_i32_0 : i32, i32, i32
  }
  func.func @transform_1(%arg0: i32) -> (i32, i32, i32) {
    %c0_i32 = arith.constant 0 : i32
    %c0_i32_0 = arith.constant 0 : i32
    %c0_i32_1 = arith.constant 0 : i32
    return %arg0, %c0_i32, %c0_i32_0 : i32, i32, i32
  }
  func.func @transform_2(%arg0: i32) -> (i32, i32, i32) {
    %c0_i32 = arith.constant 0 : i32
    %c0_i32_0 = arith.constant 0 : i32
    %c0_i32_1 = arith.constant 0 : i32
    return %arg0, %c0_i32, %c0_i32_0 : i32, i32, i32
  }
}

module attributes {stable_mosaic.version = 11 : i64} {
  func.func @_nms_kernel(%arg0: i32, %arg1: memref<1x8x128xf32, #tpu.memory_space<vmem>>, %arg2: memref<1x128x8xf32, #tpu.memory_space<vmem>>, %arg3: memref<1x8x128xf32, #tpu.memory_space<vmem>>, %arg4: memref<1x1x128xf32, #tpu.memory_space<vmem>>, %arg5: memref<128x128xf32, #tpu.memory_space<vmem>>) attributes {dimension_semantics = [#tpu.dimension_semantics<parallel>], iteration_bounds = array<i64: 2>, scalar_prefetch = 0 : i64, scratch_operands = 1 : i64, tpu.core_type = #tpu.core_type<tc>, window_params = [{transform_indices = @transform_0, window_bounds = array<i64: 1, 8, 128>}, {transform_indices = @transform_1, window_bounds = array<i64: 1, 128, 8>}, {transform_indices = @transform_2, window_bounds = array<i64: 1, 8, 128>}, {transform_indices = @transform_3, window_bounds = array<i64: 1, 1, 128>}]} {
    %c0 = arith.constant 0 : index
    %c0_0 = arith.constant 0 : index
    %c0_1 = arith.constant 0 : index
    %0 = vector.load %arg1[%c0, %c0_0, %c0_1] : memref<1x8x128xf32, #tpu.memory_space<vmem>>, vector<1x8x128xf32>
    %1 = vector.shape_cast %0 : vector<1x8x128xf32> to vector<8x128xf32>
    %2 = vector.extract_strided_slice %1 {offsets = [0, 0], sizes = [1, 128], strides = [1, 1]} : vector<8x128xf32> to vector<1x128xf32>
    %3 = vector.extract_strided_slice %1 {offsets = [1, 0], sizes = [1, 128], strides = [1, 1]} : vector<8x128xf32> to vector<1x128xf32>
    %4 = vector.extract_strided_slice %1 {offsets = [2, 0], sizes = [1, 128], strides = [1, 1]} : vector<8x128xf32> to vector<1x128xf32>
    %5 = vector.extract_strided_slice %1 {offsets = [3, 0], sizes = [1, 128], strides = [1, 1]} : vector<8x128xf32> to vector<1x128xf32>
    %6 = vector.extract_strided_slice %1 {offsets = [6, 0], sizes = [1, 128], strides = [1, 1]} : vector<8x128xf32> to vector<1x128xf32>
    %7 = vector.extract_strided_slice %1 {offsets = [7, 0], sizes = [1, 128], strides = [1, 1]} : vector<8x128xf32> to vector<1x128xf32>
    %cst = arith.constant 5.000000e-01 : f32
    %8 = vector.broadcast %cst : f32 to vector<1x128xf32>
    %9 = arith.cmpf ogt, %7, %8 : vector<1x128xf32>
    %10 = arith.subf %4, %2 : vector<1x128xf32>
    %11 = arith.subf %5, %3 : vector<1x128xf32>
    %12 = arith.mulf %10, %11 : vector<1x128xf32>
    %c0_2 = arith.constant 0 : index
    %c0_3 = arith.constant 0 : index
    %c0_4 = arith.constant 0 : index
    %13 = vector.load %arg2[%c0_2, %c0_3, %c0_4] : memref<1x128x8xf32, #tpu.memory_space<vmem>>, vector<1x128x8xf32>
    %14 = vector.shape_cast %13 : vector<1x128x8xf32> to vector<128x8xf32>
    %15 = vector.extract_strided_slice %14 {offsets = [0, 0], sizes = [128, 1], strides = [1, 1]} : vector<128x8xf32> to vector<128x1xf32>
    %16 = vector.extract_strided_slice %14 {offsets = [0, 1], sizes = [128, 1], strides = [1, 1]} : vector<128x8xf32> to vector<128x1xf32>
    %17 = vector.extract_strided_slice %14 {offsets = [0, 2], sizes = [128, 1], strides = [1, 1]} : vector<128x8xf32> to vector<128x1xf32>
    %18 = vector.extract_strided_slice %14 {offsets = [0, 3], sizes = [128, 1], strides = [1, 1]} : vector<128x8xf32> to vector<128x1xf32>
    %19 = vector.extract_strided_slice %14 {offsets = [0, 6], sizes = [128, 1], strides = [1, 1]} : vector<128x8xf32> to vector<128x1xf32>
    %20 = arith.subf %17, %15 : vector<128x1xf32>
    %21 = arith.subf %18, %16 : vector<128x1xf32>
    %22 = arith.mulf %20, %21 : vector<128x1xf32>
    %23 = vector.broadcast %15 : vector<128x1xf32> to vector<128x128xf32>
    %24 = vector.broadcast %2 : vector<1x128xf32> to vector<128x128xf32>
    %25 = arith.maximumf %23, %24 : vector<128x128xf32>
    %26 = vector.broadcast %16 : vector<128x1xf32> to vector<128x128xf32>
    %27 = vector.broadcast %3 : vector<1x128xf32> to vector<128x128xf32>
    %28 = arith.maximumf %26, %27 : vector<128x128xf32>
    %29 = vector.broadcast %17 : vector<128x1xf32> to vector<128x128xf32>
    %30 = vector.broadcast %4 : vector<1x128xf32> to vector<128x128xf32>
    %31 = arith.minimumf %29, %30 : vector<128x128xf32>
    %32 = vector.broadcast %18 : vector<128x1xf32> to vector<128x128xf32>
    %33 = vector.broadcast %5 : vector<1x128xf32> to vector<128x128xf32>
    %34 = arith.minimumf %32, %33 : vector<128x128xf32>
    %35 = arith.subf %31, %25 : vector<128x128xf32>
    %cst_5 = arith.constant 0.000000e+00 : f32
    %36 = vector.broadcast %cst_5 : f32 to vector<128x128xf32>
    %37 = arith.maximumf %35, %36 : vector<128x128xf32>
    %38 = arith.subf %34, %28 : vector<128x128xf32>
    %cst_6 = arith.constant 0.000000e+00 : f32
    %39 = vector.broadcast %cst_6 : f32 to vector<128x128xf32>
    %40 = arith.maximumf %38, %39 : vector<128x128xf32>
    %41 = arith.mulf %37, %40 : vector<128x128xf32>
    %42 = vector.broadcast %22 : vector<128x1xf32> to vector<128x128xf32>
    %43 = vector.broadcast %12 : vector<1x128xf32> to vector<128x128xf32>
    %44 = arith.addf %42, %43 : vector<128x128xf32>
    %45 = arith.subf %44, %41 : vector<128x128xf32>
    %46 = vector.broadcast %19 : vector<128x1xf32> to vector<128x128xf32>
    %47 = vector.broadcast %6 : vector<1x128xf32> to vector<128x128xf32>
    %48 = arith.cmpf oeq, %46, %47 : vector<128x128xf32>
    %cst_7 = arith.constant 5.500000e-01 : f32
    %49 = vector.broadcast %cst_7 : f32 to vector<128x128xf32>
    %50 = arith.mulf %49, %45 : vector<128x128xf32>
    %51 = arith.cmpf oge, %41, %50 : vector<128x128xf32>
    %52 = arith.andi %48, %51 : vector<128x128xi1>
    %53 = arith.extui %52 : vector<128x128xi1> to vector<128x128xi32>
    %54 = arith.sitofp %53 : vector<128x128xi32> to vector<128x128xf32>
    %c0_8 = arith.constant 0 : index
    %c0_9 = arith.constant 0 : index
    %55 = vector.load %arg5[%c0_8, %c0_9] : memref<128x128xf32, #tpu.memory_space<vmem>>, vector<128x128xf32>
    tpu.vector_store %arg5[%c0_8, %c0_9], %54 {strides = array<i32>} : memref<128x128xf32, #tpu.memory_space<vmem>>, vector<128x128xf32>,
    %56 = tpu.iota {dimensions = array<i32: 1>} : vector<1x128xi32>
    %cst_10 = arith.constant 0.000000e+00 : f32
    %57 = vector.broadcast %cst_10 : f32 to vector<1x128xf32>
    %c0_i32 = arith.constant 0 : i32
    %c128_i32 = arith.constant 128 : i32
    %58 = arith.addi %c0_i32, %c128_i32 : i32
    %c1_i32 = arith.constant 1 : i32
    %59 = scf.for %arg6 = %c0_i32 to %58 step %c1_i32 iter_args(%arg7 = %57) -> (vector<1x128xf32>)  : i32 {
      %72 = arith.index_cast %arg6 : i32 to index
      %c0_19 = arith.constant 0 : index
      %73 = vector.load %arg5[%72, %c0_19] : memref<128x128xf32, #tpu.memory_space<vmem>>, vector<1x128xf32>
      %cst_20 = arith.constant 5.000000e-01 : f32
      %74 = vector.broadcast %cst_20 : f32 to vector<1x128xf32>
      %75 = arith.cmpf ogt, %arg7, %74 : vector<1x128xf32>
      %cst_21 = arith.constant 5.000000e-01 : f32
      %76 = vector.broadcast %cst_21 : f32 to vector<1x128xf32>
      %77 = arith.cmpf ogt, %73, %76 : vector<1x128xf32>
      %78 = arith.andi %75, %77 : vector<1x128xi1>
      %cst_22 = arith.constant 1.000000e+00 : f32
      %cst_23 = arith.constant 0.000000e+00 : f32
      %79 = vector.broadcast %cst_22 : f32 to vector<1x128xf32>
      %80 = vector.broadcast %cst_23 : f32 to vector<1x128xf32>
      %81 = arith.select %78, %79, %80 : vector<1x128xi1>, vector<1x128xf32>
      %82 = vector.shape_cast %81 : vector<1x128xf32> to vector<1x1x128xf32>
      %cst_24 = arith.constant dense<0xFF800000> : vector<1xf32>
      %83 = vector.multi_reduction <maximumf>, %82, %cst_24 [1, 2] : vector<1x1x128xf32> to vector<1xf32>
      %84 = vector.shape_cast %83 : vector<1xf32> to vector<1x1x1xf32>
      %85 = vector.extract %84[0, 0, 0] : f32 from vector<1x1x1xf32>
      %cst_25 = arith.constant 0.000000e+00 : f32
      %86 = arith.cmpf ogt, %85, %cst_25 : f32
      %true = arith.constant true
      %87 = arith.xori %86, %true : i1
      %88 = vector.broadcast %87 : i1 to vector<1x128xi1>
      %89 = arith.andi %9, %88 : vector<1x128xi1>
      %90 = arith.extui %89 : vector<1x128xi1> to vector<1x128xi32>
      %91 = arith.sitofp %90 : vector<1x128xi32> to vector<1x128xf32>
      %92 = vector.broadcast %arg6 : i32 to vector<1x128xi32>
      %93 = arith.cmpi eq, %56, %92 : vector<1x128xi32>
      %94 = arith.select %93, %91, %arg7 : vector<1x128xi1>, vector<1x128xf32>
      scf.yield %94 : vector<1x128xf32>
    }
    %c128_i32_11 = arith.constant 128 : i32
    %cst_12 = arith.constant 0.000000e+00 : f32
    %60 = vector.broadcast %cst_12 : f32 to vector<1x128xf32>
    %61 = arith.sitofp %arg0 : i32 to f32
    %62 = vector.broadcast %61 : f32 to vector<1x128xf32>
    %63 = arith.addf %60, %62 : vector<1x128xf32>
    %64 = vector.extract_strided_slice %1 {offsets = [0, 0], sizes = [7, 128], strides = [1, 1]} : vector<8x128xf32> to vector<7x128xf32>
    %65 = tpu.concatenate %63, %64 in 0 : vector<1x128xf32>, vector<7x128xf32> -> vector<8x128xf32>
    %c0_13 = arith.constant 0 : index
    %c0_14 = arith.constant 0 : index
    %c0_15 = arith.constant 0 : index
    %66 = vector.load %arg3[%c0_13, %c0_14, %c0_15] : memref<1x8x128xf32, #tpu.memory_space<vmem>>, vector<1x8x128xf32>
    %67 = vector.shape_cast %66 : vector<1x8x128xf32> to vector<8x128xf32>
    %68 = vector.shape_cast %65 : vector<8x128xf32> to vector<1x8x128xf32>
    tpu.vector_store %arg3[%c0_13, %c0_14, %c0_15], %68 {strides = array<i32>} : memref<1x8x128xf32, #tpu.memory_space<vmem>>, vector<1x8x128xf32>,
    %c0_16 = arith.constant 0 : index
    %c0_17 = arith.constant 0 : index
    %c0_18 = arith.constant 0 : index
    %69 = vector.load %arg4[%c0_16, %c0_17, %c0_18] : memref<1x1x128xf32, #tpu.memory_space<vmem>>, vector<1x1x128xf32>
    %70 = vector.shape_cast %69 : vector<1x1x128xf32> to vector<1x128xf32>
    %71 = vector.shape_cast %59 : vector<1x128xf32> to vector<1x1x128xf32>
    tpu.vector_store %arg4[%c0_16, %c0_17, %c0_18], %71 {strides = array<i32>} : memref<1x1x128xf32, #tpu.memory_space<vmem>>, vector<1x1x128xf32>,
    return
  }
  func.func @transform_0(%arg0: i32) -> (i32, i32, i32) {
    %c0_i32 = arith.constant 0 : i32
    %c0_i32_0 = arith.constant 0 : i32
    %c0_i32_1 = arith.constant 0 : i32
    return %arg0, %c0_i32, %c0_i32_0 : i32, i32, i32
  }
  func.func @transform_1(%arg0: i32) -> (i32, i32, i32) {
    %c0_i32 = arith.constant 0 : i32
    %c0_i32_0 = arith.constant 0 : i32
    %c0_i32_1 = arith.constant 0 : i32
    return %arg0, %c0_i32, %c0_i32_0 : i32, i32, i32
  }
  func.func @transform_2(%arg0: i32) -> (i32, i32, i32) {
    %c0_i32 = arith.constant 0 : i32
    %c0_i32_0 = arith.constant 0 : i32
    %c0_i32_1 = arith.constant 0 : i32
    return %arg0, %c0_i32, %c0_i32_0 : i32, i32, i32
  }
  func.func @transform_3(%arg0: i32) -> (i32, i32, i32) {
    %c0_i32 = arith.constant 0 : i32
    %c0_i32_0 = arith.constant 0 : i32
    %c0_i32_1 = arith.constant 0 : i32
    return %arg0, %c0_i32, %c0_i32_0 : i32, i32, i32
  }
}

</mosaic_0001>

<bundles_post_ra>
// kernel: neg.0
= control target key start
LH: loop header
LB: loop body
LE: loop exit
PB: predicated region body
PF: predicated region fallthrough
CT: control target
= control target key end

     0   :  { %s40_s0 = inlined_call_operand.vmem [shape: f32[2,1,128], index: 0, kind: input, shape index: {}]   ;;  %s41_s1 = inlined_call_operand.vmem [shape: f32[2,1,128], index: 1, kind: output, shape index: {}]  }
   0x1   :  { %v2_v0 = vld [vmem:[%s40_s0] sm:$0x1]  ;;  %v16_v1 = vld [vmem:[%s40_s0 + $0x1] sm:$0x1] }
   0x2   :  { %v5_v2 = vxor.u32 2147483648, %v2_v0  ;;  %v12_v3 = vxor.u32 2147483648, %v16_v1 }
   0x4   :  { %7 = vst [vmem:[%s41_s1] sm:$0x1] %v5_v2  ;;  %17 = vst [vmem:[%s41_s1 + $0x1] sm:$0x1] %v12_v3 }

// kernel: nms_layer.2
= control target key start
LH: loop header
LB: loop body
LE: loop exit
PB: predicated region body
PF: predicated region fallthrough
CT: control target
= control target key end

     0   :  { %8 = vsyncpa [#allocation3], 0  ;;  %s698_s0 = inlined_call_operand.hbm [shape: f32[2,16,128], index: 0, kind: input, shape index: {}]   ;;  %s699_s1 = inlined_call_operand.hbm [shape: f32[2,8,128], index: 1, kind: output, shape index: {0}]   ;;  %s700_s2 = inlined_call_operand.vmem [shape: f32[2,1,128], index: 2, kind: output, shape index: {1}]  }
   0x1   :  { %10 = vsyncpa [#allocation3 + $0x1], 0 }
   0x2   :  { %11 = vsyncpa [#allocation4], 0 }
   0x3   :  { %13 = vsyncpa [#allocation4 + $0x1], 0  ;;  %s526_s9 = smov 0   ;;  %s528_s10 = smov 0  }
   0x4   :  { %s530_s11 = smov 0   ;;  %s532_s12 = smov 0  }
   0x5 LB: > { %s547_s13 = sadd.s32 4294967295, %s504_s12   ;;  %s344_s14 = sadd.s32 4294967294, %s504_s12   ;;  %s504_s12 = sphi %s532_s12, %s713_s12   ;;  %s500_s11 = sphi %s530_s11, %s712_s11   ;;  %s496_s10 = sphi %s528_s10, %s711_s10   ;;  %s492_s9 = sphi %s526_s9, %s710_s9  }
   0x6   : > { %s551_s15 = sadd.s32 1, %s504_s12   ;;  %s26_s16 = sadd.s32 1, %s500_s11 }
   0x7   : > { %s23_s17 = ssub.s32 %s504_s12, %s551_s15  ;;  %p33_p0 = scmp.ne.s32.totalorder %s500_s11, %s496_s10 }
   0x8   : > { %p24_p1 = scmp.eq.s32.totalorder %s23_s17, 0  ;;  %p34_p2 = scmp.eq.s32.totalorder %s504_s12, 0 }
   0x9   : > { %p39_p3 = scmp.ne.s32.totalorder %s496_s10, %s492_s9  ;;  %p40_p4 = scmp.eq.s32.totalorder %s547_s13, 0 }
   0xa   : > { %s563_s18 = scalar_select %p24_p1, %s500_s11, %s26_s16  }
   0xb   : > { %p565_p5 = por %p34_p2, %p33_p0  ;;  %p569_p6 = por %p40_p4, %p39_p3 }
   0xc   : > { %p63_p7 = scmp.eq.s32.totalorder %s547_s13, 1  ;;  %p69_p8 = scmp.eq.s32.totalorder %s344_s14, 1 }
   0xd   : > { %p371_p10 = scmp.lt.s32.totalorder %s504_s12, 2  ;;  %s115_s23 = sand.u32 1, %s500_s11  }
   0xe   : > { %p576_p11 = por %p63_p7, %p33_p0  ;;  %p580_p12 = por %p69_p8, %p39_p3 }
   0xf   : > { %s358_s24 = sshll.u32 %s504_s12, 8  ;;  %s347_s25 = sshll.u32 %s115_s23, 4 }
  0x10   : > { %s704_s21 = scalar_select %p576_p11, 1, 0 }
  0x11   : > { %s705_s22 = scalar_select %p580_p12, 1, 0 }
  0x12   : > { %s589_s28 = scalar_lea.hbm %s698_s0, %s358_s24  ;;  %s119_s29 = scalar_lea.vmem [#allocation2], %s347_s25 }
  0x13   : > { %s126_s30 = sshll.u32 %s119_s29, 4  ;;  %p593_p13 = pnand %p371_p10, %p565_p5  ;;  %s597_s30 = int_to_ptr.vmem [resolvable:$true] %s126_s30 }
  0x14   : > { %s599_s4 = scalar_lea.sflag [#allocation3], %s115_s23  ;;  %s408_s5 = scalar_lea.hbm %s589_s28, 256 }
  0x15   : > { %p409_p0 = scmp.ne.s32.totalorder %s589_s28, %s408_s5  ;;  %p410_p1 = pneg %p593_p13 }
  0x16   : > { %s413_s8 = scalar_lea.hbm %s698_s0, 512  ;;  %p414_p4 = scmp.lt.u32.totalorder %s589_s28, %s698_s0 }
  0x17   : > { %p411_p2 = pnand %p410_p1, %p409_p0  ;;  %p415_p5 = scmp.lt.u32.totalorder %s413_s8, %s408_s5 }
  0x18   : > { %p417_p8 = scmp.lt.u32.totalorder %s408_s5, %s589_s28 }
  0x19   : > { %p412_p3 = pneg %p411_p2  ;;  %p416_p7 = por %p415_p5, %p414_p4 }
  0x1b   : > { %p418_p10 = por %p417_p8, %p416_p7 }
  0x1d   : > { %p419_p9 = pnand %p418_p10, %p412_p3 }
  0x1f   : > { %422 = shalt.err (!%p419_p9)
}
  0x20   : > { %s423_s17 = scalar_lea.vmem %s597_s30, 256  ;;  %s506_s19 = smov [#allocation2]  }
  0x21   : > { %p424_p0 = scmp.ne.s32.totalorder %s597_s30, %s423_s17  ;;  %s428_s23 = sshll.u32 %s506_s19, 4  ;;  %s429_s23 = int_to_ptr.vmem [resolvable:$false] %s428_s23 }
  0x22   : > { %s430_s24 = scalar_lea.vmem %s429_s23, 512  ;;  %p431_p11 = scmp.lt.s32.totalorder %s597_s30, %s429_s23 }
  0x23   : > { %p426_p2 = pnand %p424_p0, %p410_p1  ;;  %p432_p4 = scmp.lt.s32.totalorder %s430_s24, %s423_s17 }
  0x25   : > { %p427_p12 = pneg %p426_p2  ;;  %p433_p5 = por %p432_p4, %p431_p11 }
  0x27   : > { %p434_p7 = pnand %p433_p5, %p427_p12 }
  0x29   : > { %437 = shalt.err (!%p434_p7)
}
  0x2a   : > { %s507_s25 = smov 128   ;;  %s508_s26 = smov 8  }
  0x2b   : > { %366 = dma.hbm_to_vmem [thread:$0]  (!%p593_p13), %s589_s28, 256, %s597_s30, %s599_s4, %s507_s25, %s507_s25, %s508_s26  }
  0x2c   : > { %p350_p9 = scmp.ge.s32.totalorder %s504_s12, 1  ;;  %p134_p1 = scmp.lt.s32.totalorder %s504_s12, 3 }
  0x2e   : > { %p135_p3 = pnand %p350_p9, %p134_p1 }
  0x2f   : > { %s630_s27 = sand.u32 (!%p135_p3), 1, %s496_s10  }
  0x30   : > { %138 = sbr.rel (%p135_p3) target bundleno = 107 (0x6b), region = 24  ;;  %s351_s29 = sshll.u32 (!%p135_p3), %s630_s27, 4 }
  0x31   : > { %s141_s5 = scalar_lea.sflag (!%p135_p3), [#allocation3], %s630_s27  ;;  %s144_s6 = scalar_lea.vmem (!%p135_p3), [#allocation2], %s351_s29 }
  0x37   : > { %483 = dma.done.wait (%p569_p6), %s141_s5, 256  }
  0x38   : > { %485 = vsyncadd (%p569_p6), %s141_s5, 4294967040  ;;  %vm179_vm0 = vcmask 1047557   ;;  %v188_v0 = vlaneseq  ;;  %v171_v1 = vld [vmem:[%s144_s6] sm:$0xff]  ;;  %v172_v2 = vld [vmem:[%s144_s6 + $0x8] sm:$0xff]  ;;  %p168_p11 = scmp.lt.s32.totalorder %s547_s13, 1  ;;  %vm193_vm1 = vcmask 1044480  }
  0x39   : > { %v180_v3 = vsel %vm179_vm0, %v171_v1, -inf  ;;  %v173_v9 = vmul.f32 0.5, %v171_v1  ;;  %vm212_vm2 = vcmp.gt.f32.partialorder %v171_v1, 0.65  ;;  %vm221_vm6 = vcmask 1041408   ;;  %s352_s4 = sshll.u32 %s630_s27, 3 }
  0x3a   : > { %v181_v4 = vmax.f32 %v180_v3, %v172_v2  ;;  %v189_v5 = vshrl.u32 %v188_v0, 7  ;;  %s169_s20 = scalar_select %p168_p11, %s547_s13, 1  ;;  %vm223_vm8 = vcmask 1042432   ;;  %vm225_vm9 = vcmask 1043456  }
  0x3b   : > { %v175_v14 = vrot.slane %v173_v9, 2  ;;  %v509_v33 = vmov 0.0   ;;  %vm228_vm12 = vcmask 1045504   ;;  %s162_s7 = scalar_lea.vmem [#allocation5], %s352_s4  ;;  %s355_s14 = sshll.u32 %s547_s13, 7  ;;  %vm230_vm13 = vcmask 1046528  }
  0x3c   : > { %v182_v6 = vrot.slane %v181_v4, 4  ;;  %v190_v8 = vadd.s32 8, %v189_v5  ;;  %v194_v12 = vrot.slane %v189_v5, 3  ;;  %s170_s3 = scalar_lea.vmem %s700_s2, %s169_s20  ;;  %v353_v34 = vsel %vm212_vm2, 1.0, %v509_v33  ;;  %s252_s8 = sshll.u32 %s162_s7, 4  ;;  %s651_s8 = int_to_ptr.vmem [resolvable:$true] %s252_s8 }
  0x3d   : > { %v178_v18 = vadd.f32 %v175_v14, %v171_v1  ;;  %v177_v23 = vsub.f32 %v171_v1, %v175_v14  ;;  %v219_v37 = vrot.slane %v353_v34, 5  ;;  %s656_s19 = scalar_lea.hbm %s699_s1, %s355_s14  ;;  %s236_s23 = scalar_lea.sflag [#allocation4], %s630_s27 }
  0x3e   : > { %v183_v7 = vmax.f32 %v181_v4, %v182_v6  ;;  %v195_v13 = vrot.slane %v190_v8, 3  ;;  %s438_s24 = scalar_lea.vmem %s651_s8, 128  ;;  %p707_p12 = scmp.ne.s32.totalorder %s704_s21, 0 }
  0x3f   : > { %v216_v24 = vrot.slane %v178_v18, 6  ;;  %p439_p6 = scmp.ne.s32.totalorder %s651_s8, %s438_s24  ;;  %s510_s13 = smov [#allocation5]  }
  0x40   : > { %v184_v10 = vrot.slane %v183_v7, 2  ;;  %v196_v17 = vsel %vm193_vm1, %v194_v12, %v195_v13  ;;  %s442_s25 = sshll.u32 %s510_s13, 4  ;;  %s443_s25 = int_to_ptr.vmem [resolvable:$false] %s442_s25 }
  0x41   : > { %v222_v27 = vsel %vm221_vm6, %v177_v23, %v216_v24  ;;  %p440_p13 = pnand %p439_p6, %p707_p12  ;;  %s444_s26 = scalar_lea.vmem %s443_s25, 256 }
  0x42   : > { %v185_v11 = vmax.f32 %v183_v7, %v184_v10  ;;  %v224_v30 = vsel %vm223_vm8, %v222_v27, %v216_v24  ;;  %p445_p10 = scmp.lt.s32.totalorder %s651_s8, %s443_s25  ;;  %p446_p0 = scmp.lt.s32.totalorder %s444_s26, %s438_s24 }
  0x43   : > { %v226_v35 = vsel %vm225_vm9, %v224_v30, %v171_v1  ;;  %p441_p8 = pneg %p440_p13 }
  0x44   : > { %v186_v15 = vrot.slane %v185_v11, 1  ;;  %p447_p2 = por %p446_p0, %p445_p10 }
  0x46   : > { %v187_v16 = vmax.f32 %v185_v11, %v186_v15  ;;  %p448_p4 = pnand %p447_p2, %p441_p8 }
  0x48   : > { %vm191_vm3 = vcmp.eq.f32.partialorder %v171_v1, %v187_v16  ;;  %vm192_vm4 = vcmp.eq.f32.partialorder %v172_v2, %v187_v16  ;;  %v233_v19 = vsel %vm212_vm2, %v187_v16, -1e+30  ;;  %v227_v38 = vsel %vm193_vm1, %v226_v35, %v187_v16 }
  0x49   : > { %v197_v20 = vsel %vm191_vm3, %v194_v12, 11  ;;  %v198_v21 = vsel %vm192_vm4, %v196_v17, 11  ;;  %234 = vst [vmem:[%s170_s3 - $0x4] sm:$0x10] %v233_v19 }
  0x4a   : > { %v199_v22 = vsel %vm179_vm0, %v197_v20, 2147483647 }
  0x4b   : > { %vm200_vm5 = vcmp.lt.s32.totalorder %v199_v22, %v198_v21 }
  0x4c   : > { %v201_v25 = vsel %vm200_vm5, %v199_v22, %v198_v21 }
  0x4d   : > { %v202_v26 = vrot.slane %v201_v25, 4 }
  0x4f   : > { %vm203_vm7 = vcmp.lt.s32.totalorder %v201_v25, %v202_v26 }
  0x50   : > { %v204_v28 = vsel %vm203_vm7, %v201_v25, %v202_v26 }
  0x51   : > { %v205_v29 = vrot.slane %v204_v28, 2 }
  0x53   : > { %vm206_vm10 = vcmp.lt.s32.totalorder %v204_v28, %v205_v29 }
  0x54   : > { %v207_v31 = vsel %vm206_vm10, %v204_v28, %v205_v29 }
  0x55   : > { %v208_v32 = vrot.slane %v207_v31, 1 }
  0x57   : > { %vm209_vm11 = vcmp.lt.s32.totalorder %v207_v31, %v208_v32 }
  0x58   : > { %v210_v36 = vsel %vm209_vm11, %v207_v31, %v208_v32 }
  0x59   : > { %v211_v39 = vcvt.s32.f32 %v210_v36 }
  0x5b   : > { %v229_v40 = vsel %vm228_vm12, %v227_v38, %v211_v39 }
  0x5c   : > { %v231_v41 = vsel %vm230_vm13, %v229_v40, %v219_v37 }
  0x5d   : > { %232 = vst [vmem:[%s162_s7] sm:$0xff] %v231_v41 }
  0x5e   : > { %451 = shalt.err (!%p448_p4)
}
  0x5f   : > { %s452_s27 = scalar_lea.hbm %s656_s19, 128  ;;  %s456_s6 = scalar_lea.hbm %s699_s1, 256 }
  0x60   : > { %p453_p5 = scmp.ne.s32.totalorder %s656_s19, %s452_s27  ;;  %p457_p1 = scmp.lt.u32.totalorder %s656_s19, %s699_s1 }
  0x61   : > { %p458_p3 = scmp.lt.u32.totalorder %s456_s6, %s452_s27  ;;  %p460_p6 = scmp.lt.u32.totalorder %s452_s27, %s656_s19 }
  0x62   : > { %p454_p7 = pnand %p453_p5, %p707_p12 }
  0x63   : > { %p459_p11 = por %p458_p3, %p457_p1 }
  0x64   : > { %p455_p9 = pneg %p454_p7 }
  0x65   : > { %p461_p13 = por %p460_p6, %p459_p11 }
  0x67   : > { %p462_p8 = pnand %p461_p13, %p455_p9 }
  0x69   : > { %465 = shalt.err (!%p462_p8)
}
  0x6a   : > { %361 = dma.vmem_to_hbm [thread:$0]  (%p707_p12), %s651_s8, 128, %s656_s19, %s236_s23  }
  0x6b PF: > { %s267_s30 = sand.u32 1, %s492_s9   ;;  %p708_p10 = scmp.ne.s32.totalorder %s705_s22, 0 }
  0x6c   : > { %p709_p0 = scmp.ge.s32.totalorder %s504_s12, 2  ;;  %s268_s3 = scalar_lea.sflag [#allocation4], %s267_s30 }
  0x6e   : > { %p368_p2 = pnand %p709_p0, %p708_p10 }
  0x70   : > { %487 = dma.done.wait (!%p368_p2), %s268_s3, 128  }
  0x71   : > { %489 = vsyncadd (!%p368_p2), %s268_s3, 4294967168  ;;  %p16_p4 = scmp.ge.s32.totalorder %s551_s15, 4   ;;  %s710_s9 = smov %s496_s10 }
  0x72   : > { %s711_s10 = smov %s500_s11  ;;  %s712_s11 = smov %s563_s18 }
  0x73   : > { %s713_s12 = smov %s551_s15  ;;  %18 = sbr.rel (!%p16_p4) target bundleno = 5 (0x5), region = 81 }
  0x7a   :  { %279 = vsyncpa [#allocation3], 1 }
  0x7b   :  { %281 = vsyncpa [#allocation3 + $0x1], 1 }
  0x7c   :  { %282 = vsyncpa [#allocation4], 1 }
  0x7d   :  { %284 = vsyncpa [#allocation4 + $0x1], 1 }

// kernel: nms_layer.3
= control target key start
LH: loop header
LB: loop body
LE: loop exit
PB: predicated region body
PF: predicated region fallthrough
CT: control target
= control target key end

     0   :  { %9 = vsyncpa [#allocation4], 0  ;;  %s2287_s0 = inlined_call_operand.vmem [shape: f32[2,8,128], index: 0, kind: input, shape index: {}]   ;;  %s2288_s1 = inlined_call_operand.vmem [shape: f32[2,128,8], index: 1, kind: input, shape index: {}]   ;;  %s2289_s2 = inlined_call_operand.hbm [shape: f32[2,8,128], index: 2, kind: output, shape index: {0}]   ;;  %s2290_s3 = inlined_call_operand.hbm [shape: f32[2,1,128], index: 3, kind: output, shape index: {1}]  }
   0x1   :  { %11 = vsyncpa [#allocation4 + $0x1], 0 }
   0x2   :  { %12 = vsyncpa [#allocation6], 0 }
   0x3   :  { %14 = vsyncpa [#allocation6 + $0x1], 0  ;;  %s1543_s12 = smov 0   ;;  %s1545_s13 = smov 0  }
   0x4   :  { %s1547_s14 = smov 0   ;;  %s1549_s15 = smov 0  }
   0x5 LB: > { %s1564_s16 = sadd.s32 4294967295, %s1501_s15   ;;  %s1282_s17 = sadd.s32 4294967294, %s1501_s15   ;;  %s1501_s15 = sphi %s1549_s15, %s2319_s15   ;;  %s1497_s14 = sphi %s1547_s14, %s2318_s14   ;;  %s1493_s13 = sphi %s1545_s13, %s2317_s13   ;;  %s1489_s12 = sphi %s1543_s12, %s2316_s12  }
   0x6   : > { %s1568_s18 = sadd.s32 1, %s1501_s15   ;;  %s79_s19 = sadd.s32 1, %s1497_s14 }
   0x7   : > { %s76_s20 = ssub.s32 %s1501_s15, %s1568_s18  ;;  %p89_p0 = scmp.ne.s32.totalorder %s1497_s14, %s1493_s13 }
   0x8   : > { %p77_p1 = scmp.eq.s32.totalorder %s76_s20, 0  ;;  %p90_p2 = scmp.eq.s32.totalorder %s1564_s16, 1 }
   0x9   : > { %p95_p3 = scmp.ne.s32.totalorder %s1493_s13, %s1489_s12  ;;  %p96_p4 = scmp.eq.s32.totalorder %s1282_s17, 1 }
   0xa   : > { %s1579_s21 = scalar_select %p77_p1, %s1497_s14, %s79_s19  }
   0xb   : > { %p1581_p5 = por %p90_p2, %p89_p0  ;;  %p1585_p6 = por %p96_p4, %p95_p3 }
   0xc   : > { %p1285_p7 = scmp.ge.s32.totalorder %s1501_s15, 1  ;;  %p155_p8 = scmp.lt.s32.totalorder %s1501_s15, 3 }
   0xe   : > { %p156_p9 = pnand %p1285_p7, %p155_p8 }
  0x10   : > { %159 = sbr.rel (%p156_p9) target bundleno = 724 (0x2d4), region = 28 }
  0x17   : > { %p187_p10 = scmp.lt.s32.totalorder %s1564_s16, 1  ;;  %v1511_v0 = vmov 0   ;;  %s1512_s6 = smov 2   ;;  %v1513_v18 = vmov 1   ;;  %v2291_v51 = vlaneseq  ;;  %v1515_v52 = vmov 3  }
  0x18   : > { %1387 = vset.pattern.permute.xlu1 %v1511_v0  ;;  %1386 = vset.pattern.permute.xlu0 %v1511_v0  ;;  %s1514_s7 = smov 127   ;;  %v2292_v54 = vmov 2   ;;  %s1978_s8 = sand.u32 1, %s1493_s13  }
  0x19   : > { %s188_s24 = scalar_select %p187_p10, %s1564_s16, 1  ;;  %v1797_v53 = vand.u32 127, %v2291_v51 }
  0x1a   : > { %s1286_s9 = sshll.u32 %s1978_s8, 3  ;;  %s186_s11 = scalar_lea.vmem [#allocation5], %s1978_s8 }
  0x1b   : > { %s1313_s25 = sshll.u32 %s188_s24, 7  ;;  %s1287_s26 = sshll.u32 %s188_s24, 3  ;;  %2297 = vst [vmem:[#allocation9_spill] sm:$0xff] %v1797_v53 }
  0x1c   : > { %s1596_s29 = scalar_lea.vmem %s2288_s1, %s1313_s25  ;;  %s190_s5 = scalar_lea.vmem %s2287_s0, %s1287_s26 }
  0x1d   : > { %v1602_v1 = vld [vmem:[%s1596_s29 + $0x10] sm:$0xff]  ;;  %v1604_v2 = vld [vmem:[%s190_s5] sm:$0xff]  ;;  %v1615_v4 = vld [vmem:[%s1596_s29 + $0x18] sm:$0xff]  ;;  %s2189_s10 = scalar_lea.vmem [#allocation3], %s1286_s9  ;;  %s2192_s17 = smov 0  }
  0x1e   : > { %v1607_v3 = vld [vmem:[%s1596_s29] sm:$0xff]  ;;  %242 = vrot.lane.b32.xlu1 %v1602_v1, %s1512_s6  ;;  %vm197_vm0 = vcmp.gt.f32.partialorder %v1604_v2, 0.5  ;;  %v1618_v5 = vld [vmem:[%s1596_s29 + $0x8] sm:$0xff]  ;;  %v1635_v8 = vld [vmem:[%s1596_s29 + $0x38] sm:$0xff] }
  0x1f   : > { %238 = vrot.lane.b32.xlu0 %v1607_v3, %s1512_s6  ;;  %v1625_v6 = vld [vmem:[%s1596_s29 + $0x28] sm:$0xff]  ;;  %v1628_v7 = vld [vmem:[%s1596_s29 + $0x20] sm:$0xff]  ;;  %v1638_v9 = vld [vmem:[%s1596_s29 + $0x30] sm:$0xff] }
  0x20   : > { %v1645_v10 = vld [vmem:[%s1596_s29 + $0x48] sm:$0xff]  ;;  %v1648_v11 = vld [vmem:[%s1596_s29 + $0x40] sm:$0xff]  ;;  %v1655_v12 = vld [vmem:[%s1596_s29 + $0x58] sm:$0xff] }
  0x21   : > { %v1658_v13 = vld [vmem:[%s1596_s29 + $0x50] sm:$0xff]  ;;  %v1665_v14 = vld [vmem:[%s1596_s29 + $0x68] sm:$0xff]  ;;  %v1668_v15 = vld [vmem:[%s1596_s29 + $0x60] sm:$0xff] }
  0x22   : > { %244 = vrot.lane.b32.xlu1 %v1615_v4, %s1512_s6  ;;  %v1675_v16 = vld [vmem:[%s1596_s29 + $0x78] sm:$0xff]  ;;  %v1678_v17 = vld [vmem:[%s1596_s29 + $0x70] sm:$0xff] }
  0x23   : > { %240 = vrot.lane.b32.xlu0 %v1618_v5, %s1512_s6 }
  0x26   : > { %248 = vrot.lane.b32.xlu1 %v1625_v6, %s1512_s6 }
  0x27   : > { %246 = vrot.lane.b32.xlu0 %v1628_v7, %s1512_s6 }
  0x2a   : > { %252 = vrot.lane.b32.xlu1 %v1635_v8, %s1512_s6 }
  0x2b   : > { %250 = vrot.lane.b32.xlu0 %v1638_v9, %s1512_s6 }
  0x2e   : > { %256 = vrot.lane.b32.xlu1 %v1645_v10, %s1512_s6 }
  0x2f   : > { %254 = vrot.lane.b32.xlu0 %v1648_v11, %s1512_s6 }
  0x32   : > { %260 = vrot.lane.b32.xlu1 %v1655_v12, %s1512_s6 }
  0x33   : > { %258 = vrot.lane.b32.xlu0 %v1658_v13, %s1512_s6 }
  0x36   : > { %264 = vrot.lane.b32.xlu1 %v1665_v14, %s1512_s6 }
  0x37   : > { %262 = vrot.lane.b32.xlu0 %v1668_v15, %s1512_s6 }
  0x3a   : > { %268 = vrot.lane.b32.xlu1 %v1675_v16, %s1512_s6 }
  0x3b   : > { %266 = vrot.lane.b32.xlu0 %v1678_v17, %s1512_s6 }
  0x3e   : > { %387 = vperm.xlu1 %1387, %v1618_v5  }
  0x3f   : > { %383 = vperm.xlu0 %1386, %v1607_v3  }
  0x42   : > { %391 = vperm.xlu1 %1387, %v1602_v1  }
  0x43   : > { %395 = vperm.xlu0 %1386, %v1615_v4  }
  0x46   : > { %399 = vperm.xlu1 %1387, %v1628_v7  }
  0x47   : > { %403 = vperm.xlu0 %1386, %v1625_v6  }
  0x4a   : > { %407 = vperm.xlu1 %1387, %v1638_v9  }
  0x4b   : > { %411 = vperm.xlu0 %1386, %v1635_v8  }
  0x4e   : > { %415 = vperm.xlu1 %1387, %v1648_v11  }
  0x4f   : > { %419 = vperm.xlu0 %1386, %v1645_v10  }
  0x52   : > { %423 = vperm.xlu1 %1387, %v1658_v13  }
  0x53   : > { %427 = vperm.xlu0 %1386, %v1655_v12  }
  0x56   : > { %431 = vperm.xlu1 %1387, %v1668_v15  }
  0x57   : > { %435 = vperm.xlu0 %1386, %v1665_v14  }
  0x5a   : > { %439 = vperm.xlu1 %1387, %v1678_v17  }
  0x5b   : > { %443 = vperm.xlu0 %1386, %v1675_v16  }
  0x5e   : > { %1388 = vset.pattern.permute.xlu1 %v1513_v18 }
  0x5f   : > { %1389 = vset.pattern.permute.xlu0 %v1513_v18  ;;  %467 = vperm.xlu1 %1388, %v1607_v3  }
  0x60   : > { %471 = vperm.xlu0 %1389, %v1618_v5  }
  0x63   : > { %475 = vperm.xlu1 %1388, %v1602_v1  }
  0x64   : > { %483 = vperm.xlu0 %1389, %v1628_v7  }
  0x67   : > { %479 = vperm.xlu1 %1388, %v1615_v4  }
  0x68   : > { %491 = vperm.xlu0 %1389, %v1638_v9  }
  0x6b   : > { %487 = vperm.xlu1 %1388, %v1625_v6  }
  0x6c   : > { %499 = vperm.xlu0 %1389, %v1648_v11  }
  0x6f   : > { %495 = vperm.xlu1 %1388, %v1635_v8  }
  0x70   : > { %507 = vperm.xlu0 %1389, %v1658_v13  }
  0x73   : > { %503 = vperm.xlu1 %1388, %v1645_v10  }
  0x74   : > { %515 = vperm.xlu0 %1389, %v1668_v15  }
  0x77   : > { %511 = vperm.xlu1 %1388, %v1655_v12  }
  0x7b   : > { %519 = vperm.xlu1 %1388, %v1665_v14  }
  0x90   : > { %v243_v20 = vpop.permute.xlu1 %242 }
  0x91   : > { %v239_v19 = vpop.permute.xlu0 %238  ;;  %v1720_v22 = vsub.f32 %v1602_v1, %v243_v20  ;;  %v2293_v20 = vmov 6  }
  0x92   : > { %v1715_v21 = vsub.f32 %v1607_v3, %v239_v19 }
  0x94   : > { %318 = vrot.lane.b32.xlu0 %v1715_v21, %s1514_s7  ;;  %v245_v24 = vpop.permute.xlu1 %244 }
  0x95   : > { %v241_v23 = vpop.permute.xlu0 %240  ;;  %v1730_v26 = vsub.f32 %v1615_v4, %v245_v24 }
  0x96   : > { %v1723_v25 = vsub.f32 %v1618_v5, %v241_v23 }
  0x98   : > { %322 = vrot.lane.b32.xlu0 %v1720_v22, %s1514_s7  ;;  %320 = vrot.lane.b32.xlu1 %v1723_v25, %s1514_s7  ;;  %v249_v28 = vpop.permute.xlu1 %248 }
  0x99   : > { %v247_v27 = vpop.permute.xlu0 %246  ;;  %v1740_v30 = vsub.f32 %v1625_v6, %v249_v28 }
  0x9a   : > { %v1733_v29 = vsub.f32 %v1628_v7, %v247_v27 }
  0x9c   : > { %324 = vrot.lane.b32.xlu1 %v1730_v26, %s1514_s7  ;;  %326 = vrot.lane.b32.xlu0 %v1733_v29, %s1514_s7  ;;  %v253_v32 = vpop.permute.xlu1 %252 }
  0x9d   : > { %v251_v31 = vpop.permute.xlu0 %250  ;;  %v1750_v34 = vsub.f32 %v1635_v8, %v253_v32 }
  0x9e   : > { %v1743_v33 = vsub.f32 %v1638_v9, %v251_v31 }
  0xa0   : > { %328 = vrot.lane.b32.xlu1 %v1740_v30, %s1514_s7  ;;  %330 = vrot.lane.b32.xlu0 %v1743_v33, %s1514_s7  ;;  %v257_v36 = vpop.permute.xlu1 %256 }
  0xa1   : > { %v255_v35 = vpop.permute.xlu0 %254  ;;  %v1760_v38 = vsub.f32 %v1645_v10, %v257_v36 }
  0xa2   : > { %v1753_v37 = vsub.f32 %v1648_v11, %v255_v35 }
  0xa4   : > { %332 = vrot.lane.b32.xlu1 %v1750_v34, %s1514_s7  ;;  %334 = vrot.lane.b32.xlu0 %v1753_v37, %s1514_s7  ;;  %v261_v40 = vpop.permute.xlu1 %260 }
  0xa5   : > { %v259_v39 = vpop.permute.xlu0 %258  ;;  %v1770_v42 = vsub.f32 %v1655_v12, %v261_v40 }
  0xa6   : > { %v1763_v41 = vsub.f32 %v1658_v13, %v259_v39 }
  0xa8   : > { %336 = vrot.lane.b32.xlu1 %v1760_v38, %s1514_s7  ;;  %338 = vrot.lane.b32.xlu0 %v1763_v41, %s1514_s7  ;;  %v265_v44 = vpop.permute.xlu1 %264 }
  0xa9   : > { %v263_v43 = vpop.permute.xlu0 %262  ;;  %v1780_v46 = vsub.f32 %v1665_v14, %v265_v44 }
  0xaa   : > { %v1773_v45 = vsub.f32 %v1668_v15, %v263_v43 }
  0xac   : > { %340 = vrot.lane.b32.xlu1 %v1770_v42, %s1514_s7  ;;  %342 = vrot.lane.b32.xlu0 %v1773_v45, %s1514_s7  ;;  %v269_v48 = vpop.permute.xlu1 %268 }
  0xad   : > { %v267_v47 = vpop.permute.xlu0 %266  ;;  %v1790_v50 = vsub.f32 %v1675_v16, %v269_v48 }
  0xae   : > { %v1783_v49 = vsub.f32 %v1678_v17, %v267_v47 }
  0xb0   : > { %344 = vrot.lane.b32.xlu1 %v1780_v46, %s1514_s7  ;;  %346 = vrot.lane.b32.xlu0 %v1783_v49, %s1514_s7 }
  0xb4   : > { %348 = vrot.lane.b32.xlu1 %v1790_v50, %s1514_s7  ;;  %523 = vperm.xlu0 %1389, %v1678_v17  }
  0xb8   : > { %527 = vperm.xlu1 %1388, %v1675_v16   ;;  %1392 = vset.pattern.permute.xlu0 %v1515_v52 }
  0xb9   : > { %639 = vperm.xlu0 %1392, %v1618_v5  }
  0xbc   : > { %1390 = vset.pattern.permute.xlu1 %v2292_v54 }
  0xbd   : > { %555 = vperm.xlu1 %1390, %v1618_v5   ;;  %651 = vperm.xlu0 %1392, %v1628_v7   ;;  %v1803_v55 = vpop.permute.xlu1 %387 }
  0xbe   : > { %v1805_v56 = vpop.permute.xlu0 %383 }
  0xc1   : > { %559 = vperm.xlu1 %1390, %v1602_v1   ;;  %659 = vperm.xlu0 %1392, %v1638_v9   ;;  %v1809_v57 = vpop.permute.xlu1 %391 }
  0xc2   : > { %2298 = vst [vmem:[#allocation10_spill] sm:$0xff] %v1809_v57  ;;  %v1811_v58 = vpop.permute.xlu0 %395 }
  0xc3   : > { %2299 = vst [vmem:[#allocation11_spill] sm:$0xff] %v1811_v58  ;;  %v2305_v58 = vmov 2  }
  0xc5   : > { %567 = vperm.xlu1 %1390, %v1628_v7   ;;  %667 = vperm.xlu0 %1392, %v1648_v11   ;;  %v1815_v59 = vpop.permute.xlu1 %399 }
  0xc6   : > { %v1817_v60 = vpop.permute.xlu0 %403 }
  0xc7   : > { %2300 = vst [vmem:[#allocation12_spill] sm:$0xff] %v1817_v60 }
  0xc9   : > { %575 = vperm.xlu1 %1390, %v1638_v9   ;;  %675 = vperm.xlu0 %1392, %v1658_v13   ;;  %v1821_v61 = vpop.permute.xlu1 %407 }
  0xca   : > { %v1823_v62 = vpop.permute.xlu0 %411 }
  0xcb   : > { %2301 = vst [vmem:[#allocation13_spill] sm:$0xff] %v1823_v62 }
  0xcd   : > { %583 = vperm.xlu1 %1390, %v1648_v11   ;;  %683 = vperm.xlu0 %1392, %v1668_v15   ;;  %v1827_v63 = vpop.permute.xlu1 %415 }
  0xce   : > { %v1829_v0 = vpop.permute.xlu0 %419 }
  0xd1   : > { %591 = vperm.xlu1 %1390, %v1658_v13   ;;  %691 = vperm.xlu0 %1392, %v1678_v17   ;;  %v1833_v18 = vpop.permute.xlu1 %423 }
  0xd2   : > { %v1835_v19 = vpop.permute.xlu0 %427 }
  0xd5   : > { %599 = vperm.xlu1 %1390, %v1668_v15   ;;  %1394 = vset.pattern.permute.xlu0 %v2293_v20  ;;  %v1839_v23 = vpop.permute.xlu1 %431 }
  0xd6   : > { %919 = vperm.xlu0 %1394, %v1618_v5   ;;  %v1843_v24 = vpop.permute.xlu0 %435 }
  0xd9   : > { %607 = vperm.xlu1 %1390, %v1678_v17   ;;  %v1845_v27 = vpop.permute.xlu1 %439 }
  0xda   : > { %1395 = vset.pattern.permute.xlu0 %v2292_v54  ;;  %v1853_v31 = vpop.permute.xlu0 %443 }
  0xdb   : > { %551 = vperm.xlu0 %1395, %v1607_v3  }
  0xdd   : > { %1391 = vset.pattern.permute.xlu1 %v1515_v52 }
  0xde   : > { %635 = vperm.xlu1 %1391, %v1607_v3   ;;  %v1850_v28 = vpop.permute.xlu1 %467 }
  0xdf   : > { %563 = vperm.xlu0 %1395, %v1615_v4   ;;  %v1859_v32 = vpop.permute.xlu0 %471 }
  0xe2   : > { %643 = vperm.xlu1 %1391, %v1602_v1   ;;  %v1856_v5 = vpop.permute.xlu1 %475 }
  0xe3   : > { %2302 = vst [vmem:[#allocation14_spill] sm:$0xff] %v1856_v5  ;;  %571 = vperm.xlu0 %1395, %v1625_v6   ;;  %v1865_v36 = vpop.permute.xlu0 %483 }
  0xe6   : > { %647 = vperm.xlu1 %1391, %v1615_v4   ;;  %v1863_v35 = vpop.permute.xlu1 %479 }
  0xe7   : > { %579 = vperm.xlu0 %1395, %v1635_v8   ;;  %v1873_v40 = vpop.permute.xlu0 %491 }
  0xea   : > { %655 = vperm.xlu1 %1391, %v1625_v6   ;;  %v1869_v39 = vpop.permute.xlu1 %487 }
  0xeb   : > { %587 = vperm.xlu0 %1395, %v1645_v10   ;;  %2303 = vst [vmem:[#allocation15_spill] sm:$0xff] %v1869_v39  ;;  %v1879_v44 = vpop.permute.xlu0 %499 }
  0xee   : > { %663 = vperm.xlu1 %1391, %v1635_v8   ;;  %v1877_v43 = vpop.permute.xlu1 %495 }
  0xef   : > { %595 = vperm.xlu0 %1395, %v1655_v12   ;;  %2304 = vst [vmem:[#allocation16_spill] sm:$0xff] %v1877_v43  ;;  %v1886_v48 = vpop.permute.xlu0 %507 }
  0xf2   : > { %671 = vperm.xlu1 %1391, %v1645_v10   ;;  %v1883_v47 = vpop.permute.xlu1 %503 }
  0xf3   : > { %603 = vperm.xlu0 %1395, %v1665_v14   ;;  %v1891_v51 = vpop.permute.xlu0 %515 }
  0xf6   : > { %679 = vperm.xlu1 %1391, %v1655_v12   ;;  %v1889_v52 = vpop.permute.xlu1 %511 }
  0xf7   : > { %611 = vperm.xlu0 %1395, %v1675_v16  }
  0xfa   : > { %687 = vperm.xlu1 %1391, %v1665_v14   ;;  %v1895_v54 = vpop.permute.xlu1 %519 }
  0xfe   : > { %695 = vperm.xlu1 %1391, %v1675_v16  }
 0x102   : > { %1393 = vset.pattern.permute.xlu1 %v2293_v20 }
 0x103   : > { %915 = vperm.xlu1 %1393, %v1607_v3  }
 0x106   : > { %v319_v53 = vpop.permute.xlu0 %318 }
 0x107   : > { %v366_v62 = vmul.f32 %v319_v53, %v1715_v21  ;;  %923 = vperm.xlu1 %1393, %v1602_v1  }
 0x109   : > { %800 = vperm.xlu0 %1395, %v366_v62  }
 0x10a   : > { %v321_v43 = vpop.permute.xlu1 %320  ;;  %v323_v60 = vpop.permute.xlu0 %322 }
 0x10b   : > { %927 = vperm.xlu1 %1393, %v1615_v4   ;;  %v367_v39 = vmul.f32 %v321_v43, %v1723_v25  ;;  %v368_v3 = vmul.f32 %v323_v60, %v1720_v22 }
 0x10e   : > { %v325_v57 = vpop.permute.xlu1 %324  ;;  %v327_v5 = vpop.permute.xlu0 %326 }
 0x10f   : > { %v369_v20 = vmul.f32 %v325_v57, %v1730_v26  ;;  %1396 = vset.pattern.permute.xlu1 %v2305_v58  ;;  %v370_v4 = vmul.f32 %v327_v5, %v1733_v29 }
 0x110   : > { %805 = vperm.xlu1 %1396, %v367_v39  }
 0x111   : > { %815 = vperm.xlu0 %1395, %v369_v20  }
 0x112   : > { %v329_v21 = vpop.permute.xlu1 %328  ;;  %v331_v53 = vpop.permute.xlu0 %330 }
 0x113   : > { %v371_v1 = vmul.f32 %v329_v21, %v1740_v30  ;;  %v372_v26 = vmul.f32 %v331_v53, %v1743_v33 }
 0x114   : > { %810 = vperm.xlu1 %1396, %v368_v3  }
 0x115   : > { %825 = vperm.xlu0 %1395, %v371_v1  }
 0x116   : > { %v333_v62 = vpop.permute.xlu1 %332  ;;  %v335_v25 = vpop.permute.xlu0 %334 }
 0x117   : > { %v373_v43 = vmul.f32 %v333_v62, %v1750_v34  ;;  %v374_v30 = vmul.f32 %v335_v25, %v1753_v37 }
 0x118   : > { %820 = vperm.xlu1 %1396, %v370_v4  }
 0x119   : > { %835 = vperm.xlu0 %1395, %v373_v43  }
 0x11a   : > { %v337_v57 = vpop.permute.xlu1 %336  ;;  %v339_v22 = vpop.permute.xlu0 %338 }
 0x11b   : > { %v375_v58 = vmul.f32 %v337_v57, %v1760_v38  ;;  %v376_v34 = vmul.f32 %v339_v22, %v1763_v41  ;;  %v2307_v41 = vlaneseq }
 0x11c   : > { %830 = vperm.xlu1 %1396, %v372_v26  }
 0x11d   : > { %845 = vperm.xlu0 %1395, %v375_v58   ;;  %v1919_v53 = vshrl.u32 %v2307_v41, 7 }
 0x11e   : > { %v341_v60 = vpop.permute.xlu1 %340  ;;  %v343_v29 = vpop.permute.xlu0 %342 }
 0x11f   : > { %v377_v20 = vmul.f32 %v341_v60, %v1770_v42  ;;  %v378_v33 = vmul.f32 %v343_v29, %v1773_v45  ;;  %v2306_v42 = vmov 6   ;;  %v700_v45 = vsub.s32 3, %v1919_v53 }
 0x120   : > { %840 = vperm.xlu1 %1396, %v374_v30   ;;  %v616_v1 = vsub.s32 2, %v1919_v53 }
 0x121   : > { %855 = vperm.xlu0 %1395, %v377_v20  }
 0x122   : > { %v345_v5 = vpop.permute.xlu1 %344  ;;  %v347_v3 = vpop.permute.xlu0 %346 }
 0x123   : > { %v379_v39 = vmul.f32 %v345_v5, %v1780_v46  ;;  %v380_v37 = vmul.f32 %v347_v3, %v1783_v49  ;;  %v532_v46 = vsub.s32 1, %v1919_v53  ;;  %v448_v49 = vsub.s32 0, %v1919_v53 }
 0x124   : > { %850 = vperm.xlu1 %1396, %v376_v34  }
 0x125   : > { %865 = vperm.xlu0 %1395, %v379_v39   ;;  %v1941_v62 = vrot.slane %v1604_v2, %v448_v49 }
 0x126   : > { %v349_v38 = vpop.permute.xlu1 %348 }
 0x127   : > { %v381_v21 = vmul.f32 %v349_v38, %v1790_v50  ;;  %v451_v58 = vmax.f32 %v1803_v55, %v1941_v62 }
 0x128   : > { %860 = vperm.xlu1 %1396, %v378_v33   ;;  %v454_v33 = vmax.f32 %v1815_v59, %v1941_v62 }
 0x129   : > { %875 = vperm.xlu0 %1395, %v381_v21   ;;  %v456_v21 = vmax.f32 %v1821_v61, %v1941_v62 }
 0x12c   : > { %870 = vperm.xlu1 %1396, %v380_v37  }
 0x12d   : > { %1397 = vset.pattern.permute.xlu0 %v2306_v42 }
 0x12e   : > { %931 = vperm.xlu0 %1397, %v1628_v7   ;;  %v1931_v7 = vrot.slane %v1604_v2, %v700_v45 }
 0x130   : > { %1398 = vset.pattern.permute.xlu1 %v2306_v42 }
 0x131   : > { %935 = vperm.xlu1 %1398, %v1625_v6   ;;  %v1936_v6 = vrot.slane %v1604_v2, %v532_v46 }
 0x132   : > { %939 = vperm.xlu0 %1397, %v1638_v9  }
 0x133   : > { %v1926_v50 = vpop.permute.xlu0 %523  ;;  %v535_v25 = vmax.f32 %v1859_v32, %v1936_v6  ;;  %v538_v32 = vmax.f32 %v1865_v36, %v1936_v6  ;;  %v540_v55 = vmax.f32 %v1873_v40, %v1936_v6  ;;  %v542_v38 = vmax.f32 %v1879_v44, %v1936_v6 }
 0x134   : > { %v544_v59 = vmax.f32 %v1886_v48, %v1936_v6  ;;  %v546_v61 = vmax.f32 %v1891_v51, %v1936_v6 }
 0x135   : > { %943 = vperm.xlu1 %1398, %v1635_v8  }
 0x136   : > { %947 = vperm.xlu0 %1397, %v1648_v11   ;;  %v1950_v11 = vrot.slane %v1604_v2, %v616_v1 }
 0x137   : > { %v1938_v4 = vpop.permute.xlu1 %527 }
 0x138   : > { %v640_v9 = vpop.permute.xlu0 %639 }
 0x139   : > { %v703_v8 = vmin.f32 %v640_v9, %v1931_v7  ;;  %951 = vperm.xlu1 %1398, %v1645_v10  }
 0x13a   : > { %955 = vperm.xlu0 %1397, %v1658_v13  }
 0x13b   : > { %v751_v43 = vsub.f32 %v703_v8, %v535_v25  ;;  %v458_v25 = vmax.f32 %v1827_v63, %v1941_v62  ;;  %v548_v63 = vmax.f32 %v1926_v50, %v1936_v6 }
 0x13c   : > { %v556_v26 = vpop.permute.xlu1 %555  ;;  %v652_v57 = vpop.permute.xlu0 %651 }
 0x13d   : > { %v619_v22 = vmin.f32 %v556_v26, %v1950_v11  ;;  %v706_v10 = vmin.f32 %v652_v57, %v1931_v7  ;;  %959 = vperm.xlu1 %1398, %v1655_v12   ;;  %v767_v29 = vmax.f32 %v751_v43, 0.0 }
 0x13e   : > { %963 = vperm.xlu0 %1397, %v1668_v15  }
 0x13f   : > { %v719_v30 = vsub.f32 %v619_v22, %v451_v58  ;;  %v754_v60 = vsub.f32 %v706_v10, %v538_v32 }
 0x140   : > { %v1961_v13 = vpop.permute.xlu1 %559  ;;  %v660_v20 = vpop.permute.xlu0 %659 }
 0x141   : > { %v735_v34 = vmax.f32 %v719_v30, 0.0  ;;  %v708_v36 = vmin.f32 %v660_v20, %v1931_v7  ;;  %967 = vperm.xlu1 %1398, %v1665_v14   ;;  %v770_v42 = vmax.f32 %v754_v60, 0.0  ;;  %v460_v30 = vmax.f32 %v1833_v18, %v1941_v62 }
 0x142   : > { %971 = vperm.xlu0 %1397, %v1678_v17  }
 0x143   : > { %v756_v12 = vsub.f32 %v708_v36, %v540_v55  ;;  %v1968_v5 = vmul.f32 %v767_v29, %v735_v34 }
 0x144   : > { %v568_v15 = vpop.permute.xlu1 %567  ;;  %v668_v39 = vpop.permute.xlu0 %667 }
 0x145   : > { %v622_v40 = vmin.f32 %v568_v15, %v1950_v11  ;;  %v710_v3 = vmin.f32 %v668_v39, %v1931_v7  ;;  %975 = vperm.xlu1 %1398, %v1675_v16   ;;  %v772_v43 = vmax.f32 %v756_v12, 0.0 }
 0x147   : > { %v722_v14 = vsub.f32 %v622_v40, %v454_v33  ;;  %v758_v17 = vsub.f32 %v710_v3, %v542_v38  ;;  %v462_v33 = vmax.f32 %v1839_v23, %v1941_v62 }
 0x148   : > { %v576_v37 = vpop.permute.xlu1 %575  ;;  %v676_v44 = vpop.permute.xlu0 %675 }
 0x149   : > { %v738_v41 = vmax.f32 %v722_v14, 0.0  ;;  %v624_v45 = vmin.f32 %v576_v37, %v1950_v11  ;;  %v712_v16 = vmin.f32 %v676_v44, %v1931_v7  ;;  %v774_v20 = vmax.f32 %v758_v17, 0.0 }
 0x14b   : > { %v724_v46 = vsub.f32 %v624_v45, %v456_v21  ;;  %v760_v49 = vsub.f32 %v712_v16, %v544_v59  ;;  %v1987_v9 = vmul.f32 %v770_v42, %v738_v41  ;;  %v464_v21 = vmax.f32 %v1845_v27, %v1941_v62 }
 0x14c   : > { %v584_v8 = vpop.permute.xlu1 %583  ;;  %v684_v48 = vpop.permute.xlu0 %683 }
 0x14d   : > { %v740_v26 = vmax.f32 %v724_v46, 0.0  ;;  %v626_v57 = vmin.f32 %v584_v8, %v1950_v11  ;;  %v714_v58 = vmin.f32 %v684_v48, %v1931_v7  ;;  %v776_v18 = vmax.f32 %v760_v49, 0.0 }
 0x14f   : > { %v726_v32 = vsub.f32 %v626_v57, %v458_v25  ;;  %v762_v22 = vsub.f32 %v714_v58, %v546_v61  ;;  %v1995_v10 = vmul.f32 %v772_v43, %v740_v26 }
 0x150   : > { %v592_v60 = vpop.permute.xlu1 %591  ;;  %v692_v51 = vpop.permute.xlu0 %691 }
 0x151   : > { %v742_v55 = vmax.f32 %v726_v32, 0.0  ;;  %v628_v29 = vmin.f32 %v592_v60, %v1950_v11  ;;  %v716_v34 = vmin.f32 %v692_v51, %v1931_v7  ;;  %v778_v59 = vmax.f32 %v762_v22, 0.0 }
 0x152   : > { %v459_v22 = vmax.f32 %v1829_v0, %v1941_v62  ;;  %v543_v60 = vmax.f32 %v1883_v47, %v1936_v6  ;;  %v199_v0 = vrot.slane %v1604_v2, 6 }
 0x153   : > { %v728_v36 = vsub.f32 %v628_v29, %v460_v30  ;;  %v764_v12 = vsub.f32 %v716_v34, %v548_v63  ;;  %v2003_v15 = vmul.f32 %v774_v20, %v742_v55  ;;  %v461_v29 = vmax.f32 %v1835_v19, %v1941_v62 }
 0x154   : > { %v600_v39 = vpop.permute.xlu1 %599 }
 0x155   : > { %v744_v38 = vmax.f32 %v728_v36, 0.0  ;;  %v630_v50 = vmin.f32 %v600_v39, %v1950_v11  ;;  %v2008_v40 = vpop.permute.xlu0 %919  ;;  %v780_v45 = vmax.f32 %v764_v12, 0.0  ;;  %v545_v36 = vmax.f32 %v1889_v52, %v1936_v6 }
 0x156   : > { %v547_v52 = vmax.f32 %v1895_v54, %v1936_v6 }
 0x157   : > { %v730_v3 = vsub.f32 %v630_v50, %v462_v33  ;;  %v2010_v14 = vmul.f32 %v776_v18, %v744_v38 }
 0x158   : > { %v608_v17 = vpop.permute.xlu1 %607 }
 0x159   : > { %v746_v37 = vmax.f32 %v730_v3, 0.0  ;;  %v632_v44 = vmin.f32 %v608_v17, %v1950_v11  ;;  %v463_v3 = vmax.f32 %v1843_v24, %v1941_v62 }
 0x15a   : > { %v2015_v42 = vpop.permute.xlu0 %551 }
 0x15b   : > { %v732_v23 = vsub.f32 %v632_v44, %v464_v21  ;;  %v2017_v41 = vmul.f32 %v778_v59, %v746_v37  ;;  %v201_v37 = vsub.f32 %v1604_v2, %v199_v0 }
 0x15d   : > { %v748_v16 = vmax.f32 %v732_v23, 0.0  ;;  %v636_v46 = vpop.permute.xlu1 %635 }
 0x15e   : > { %v2019_v49 = vpop.permute.xlu0 %563  ;;  %v702_v54 = vmin.f32 %v636_v46, %v1931_v7 }
 0x15f   : > { %v2021_v25 = vmul.f32 %v780_v45, %v748_v16 }
 0x161   : > { %v2023_v61 = vpop.permute.xlu1 %643 }
 0x162   : > { %v2025_v8 = vpop.permute.xlu0 %571 }
 0x165   : > { %v2027_v27 = vpop.permute.xlu1 %647 }
 0x166   : > { %v2029_v48 = vpop.permute.xlu0 %579 }
 0x169   : > { %v2031_v43 = vpop.permute.xlu1 %655 }
 0x16a   : > { %v588_v26 = vpop.permute.xlu0 %587 }
 0x16b   : > { %v627_v58 = vmin.f32 %v588_v26, %v1950_v11  ;;  %v465_v26 = vmax.f32 %v1853_v31, %v1941_v62  ;;  %v618_v31 = vmin.f32 %v2015_v42, %v1950_v11 }
 0x16d   : > { %v2033_v57 = vpop.permute.xlu1 %663  ;;  %v727_v51 = vsub.f32 %v627_v58, %v459_v22 }
 0x16e   : > { %v596_v32 = vpop.permute.xlu0 %595 }
 0x16f   : > { %v629_v30 = vmin.f32 %v596_v32, %v1950_v11  ;;  %v743_v33 = vmax.f32 %v727_v51, 0.0  ;;  %v549_v32 = vmax.f32 %v1938_v4, %v1936_v6  ;;  %v450_v4 = vmax.f32 %v1805_v56, %v1941_v62 }
 0x170   : > { %v537_v56 = vmax.f32 %v1863_v35, %v1936_v6 }
 0x171   : > { %v672_v63 = vpop.permute.xlu1 %671  ;;  %v729_v12 = vsub.f32 %v629_v30, %v461_v29  ;;  %v203_v30 = vrot.slane %v201_v37, 1 }
 0x172   : > { %v711_v20 = vmin.f32 %v672_v63, %v1931_v7  ;;  %v604_v55 = vpop.permute.xlu0 %603 }
 0x173   : > { %v631_v38 = vmin.f32 %v604_v55, %v1950_v11  ;;  %v745_v21 = vmax.f32 %v729_v12, 0.0  ;;  %v534_v55 = vmax.f32 %v1850_v28, %v1936_v6  ;;  %v705_v28 = vmin.f32 %v2027_v27, %v1931_v7 }
 0x174   : > { %v759_v34 = vsub.f32 %v711_v20, %v543_v60  ;;  %v980_v27 = vsub.s32 6, %v1919_v53 }
 0x175   : > { %v680_v39 = vpop.permute.xlu1 %679  ;;  %v731_v44 = vsub.f32 %v631_v38, %v463_v3  ;;  %v750_v46 = vsub.f32 %v702_v54, %v534_v55  ;;  %v621_v3 = vmin.f32 %v2019_v49, %v1950_v11  ;;  %v1518_v55 = vmov 0.0  }
 0x176   : > { %v775_v18 = vmax.f32 %v759_v34, 0.0  ;;  %v713_v47 = vmin.f32 %v680_v39, %v1931_v7  ;;  %v612_v50 = vpop.permute.xlu0 %611  ;;  %v2099_v54 = vrot.slane %v1604_v2, %v980_v27 }
 0x177   : > { %v633_v45 = vmin.f32 %v612_v50, %v1950_v11  ;;  %v747_v63 = vmax.f32 %v731_v44, 0.0  ;;  %v766_v38 = vmax.f32 %v750_v46, 0.0 }
 0x178   : > { %v761_v17 = vsub.f32 %v713_v47, %v545_v36  ;;  %v2051_v19 = vmul.f32 %v775_v18, %v743_v33  ;;  %v205_v36 = vmul.f32 %v203_v30, %v201_v37  ;;  %v718_v33 = vsub.f32 %v618_v31, %v450_v4 }
 0x179   : > { %v688_v59 = vpop.permute.xlu1 %687  ;;  %v733_v60 = vsub.f32 %v633_v45, %v465_v26  ;;  %v753_v37 = vsub.f32 %v705_v28, %v537_v56  ;;  %v620_v45 = vmin.f32 %v1961_v13, %v1950_v11  ;;  %vm983_vm4 = vcmp.eq.f32.partialorder %v2008_v40, %v2099_v54 }
 0x17a   : > { %v777_v23 = vmax.f32 %v761_v17, 0.0  ;;  %v715_v16 = vmin.f32 %v688_v59, %v1931_v7  ;;  %v2080_v42 = vrot.slane %v205_v36, %v616_v1  ;;  %v734_v50 = vmax.f32 %v718_v33, 0.0  ;;  %v2308_v17 = vld [vmem:[#allocation11_spill] sm:$0xff] }
 0x17b   : > { %v749_v12 = vmax.f32 %v733_v60, 0.0  ;;  %v769_v53 = vmax.f32 %v753_v37, 0.0 }
 0x17c   : > { %v763_v24 = vsub.f32 %v715_v16, %v547_v52  ;;  %v2060_v58 = vmul.f32 %v777_v23, %v745_v21  ;;  %v453_v52 = vmax.f32 %v2308_v17, %v1941_v62  ;;  %v704_v21 = vmin.f32 %v2023_v61, %v1931_v7  ;;  %v2309_v23 = vld [vmem:[#allocation14_spill] sm:$0xff] }
 0x17d   : > { %v696_v22 = vpop.permute.xlu1 %695  ;;  %v782_v1 = vmul.f32 %v766_v38, %v734_v50  ;;  %v536_v35 = vmax.f32 %v2309_v23, %v1936_v6  ;;  %v623_v23 = vmin.f32 %v2025_v8, %v1950_v11 }
 0x17e   : > { %v779_v51 = vmax.f32 %v763_v24, 0.0  ;;  %v717_v20 = vmin.f32 %v696_v22, %v1931_v7  ;;  %v721_v16 = vsub.f32 %v621_v3, %v453_v52  ;;  %v2310_v24 = vld [vmem:[#allocation10_spill] sm:$0xff] }
 0x17f   : > { %v752_v61 = vsub.f32 %v704_v21, %v536_v35  ;;  %v2312_v35 = vld [vmem:[#allocation12_spill] sm:$0xff] }
 0x180   : > { %v765_v29 = vsub.f32 %v717_v20, %v549_v32  ;;  %v2070_v34 = vmul.f32 %v779_v51, %v747_v63  ;;  %v452_v32 = vmax.f32 %v2310_v24, %v1941_v62  ;;  %v737_v63 = vmax.f32 %v721_v16, 0.0  ;;  %v2313_v16 = vld [vmem:[#allocation16_spill] sm:$0xff] }
 0x181   : > { %v768_v51 = vmax.f32 %v752_v61, 0.0  ;;  %v625_v24 = vmin.f32 %v2029_v48, %v1950_v11 }
 0x182   : > { %v781_v39 = vmax.f32 %v765_v29, 0.0  ;;  %v916_v0 = vpop.permute.xlu1 %915  ;;  %v720_v30 = vsub.f32 %v620_v45, %v452_v32  ;;  %v785_v29 = vmul.f32 %v769_v53, %v737_v63  ;;  %v455_v45 = vmax.f32 %v2312_v35, %v1941_v62  ;;  %v2314_v53 = vld [vmem:[#allocation13_spill] sm:$0xff] }
 0x183   : > { %vm982_vm1 = vcmp.eq.f32.partialorder %v916_v0, %v2099_v54  ;;  %v457_v8 = vmax.f32 %v2314_v53, %v1941_v62 }
 0x184   : > { %v2074_v18 = vmul.f32 %v781_v39, %v749_v12  ;;  %v736_v46 = vmax.f32 %v720_v30, 0.0  ;;  %v723_v61 = vsub.f32 %v623_v23, %v455_v45 }
 0x185   : > { %v725_v63 = vsub.f32 %v625_v24, %v457_v8 }
 0x186   : > { %v924_v47 = vpop.permute.xlu1 %923  ;;  %v784_v33 = vmul.f32 %v768_v51, %v736_v46  ;;  %v739_v51 = vmax.f32 %v723_v61, 0.0 }
 0x187   : > { %vm984_vm10 = vcmp.eq.f32.partialorder %v924_v47, %v2099_v54  ;;  %v709_v47 = vmin.f32 %v2033_v57, %v1931_v7 }
 0x188   : > { %v801_v59 = vpop.permute.xlu0 %800 }
 0x189   : > { %v882_v44 = vadd.f32 %v2080_v42, %v801_v59 }
 0x18a   : > { %v928_v49 = vpop.permute.xlu1 %927 }
 0x18b   : > { %v898_v26 = vsub.f32 %v882_v44, %v782_v1  ;;  %vm985_vm6 = vcmp.eq.f32.partialorder %v928_v49, %v2099_v54 }
 0x18d   : > { %v998_v22 = vmul.f32 0.55, %v898_v26  ;;  %v541_v26 = vmax.f32 %v2313_v16, %v1936_v6 }
 0x18f   : > { %vm1014_vm2 = vcmp.ge.f32.partialorder %v782_v1, %v998_v22  ;;  %v806_v60 = vpop.permute.xlu1 %805  ;;  %v2311_v1 = vld [vmem:[#allocation15_spill] sm:$0xff]  ;;  %v757_v22 = vsub.f32 %v709_v47, %v541_v26 }
 0x190   : > { %vm1030_vm3 = vmand %vm982_vm1, %vm1014_vm2  ;;  %v883_v13 = vadd.f32 %v2080_v42, %v806_v60  ;;  %v816_v20 = vpop.permute.xlu0 %815  ;;  %v539_v44 = vmax.f32 %v2311_v1, %v1936_v6 }
 0x191   : > { %v1290_v31 = vsel %vm1030_vm3, 1.0, %v1518_v55  ;;  %v885_v4 = vadd.f32 %v2080_v42, %v816_v20  ;;  %v773_v20 = vmax.f32 %v757_v22, 0.0 }
 0x192   : > { %1078 = vst [vmem:[#allocation2] sm:$0xff] %v1290_v31  ;;  %v899_v36 = vsub.f32 %v883_v13, %v1968_v5 }
 0x193   : > { %v901_v12 = vsub.f32 %v885_v4, %v785_v29  ;;  %v811_v39 = vpop.permute.xlu1 %810 }
 0x194   : > { %v999_v0 = vmul.f32 0.55, %v899_v36  ;;  %v884_v38 = vadd.f32 %v2080_v42, %v811_v39  ;;  %v826_v28 = vpop.permute.xlu0 %825 }
 0x195   : > { %v1001_v56 = vmul.f32 0.55, %v901_v12  ;;  %v887_v13 = vadd.f32 %v2080_v42, %v826_v28 }
 0x196   : > { %vm1015_vm5 = vcmp.ge.f32.partialorder %v1968_v5, %v999_v0  ;;  %v900_v50 = vsub.f32 %v884_v38, %v784_v33  ;;  %v707_v5 = vmin.f32 %v2031_v43, %v1931_v7 }
 0x197   : > { %vm1031_vm7 = vmand %vm983_vm4, %vm1015_vm5  ;;  %vm1017_vm8 = vcmp.ge.f32.partialorder %v785_v29, %v1001_v56  ;;  %v821_v3 = vpop.permute.xlu1 %820  ;;  %v741_v29 = vmax.f32 %v725_v63, 0.0 }
 0x198   : > { %v1291_v17 = vsel %vm1031_vm7, 1.0, %v1518_v55  ;;  %vm1033_vm9 = vmand %vm985_vm6, %vm1017_vm8  ;;  %v1000_v52 = vmul.f32 0.55, %v900_v50  ;;  %v836_v21 = vpop.permute.xlu0 %835  ;;  %v755_v49 = vsub.f32 %v707_v5, %v539_v44  ;;  %v886_v30 = vadd.f32 %v2080_v42, %v821_v3 }
 0x199   : > { %1079 = vst [vmem:[#allocation2 + $0x8] sm:$0xff] %v1291_v17  ;;  %v1293_v59 = vsel %vm1033_vm9, 1.0, %v1518_v55  ;;  %v889_v62 = vadd.f32 %v2080_v42, %v836_v21  ;;  %v789_v39 = vmul.f32 %v773_v20, %v741_v29 }
 0x19a   : > { %1081 = vst [vmem:[#allocation2 + $0x18] sm:$0xff] %v1293_v59  ;;  %vm1016_vm11 = vcmp.ge.f32.partialorder %v784_v33, %v1000_v52  ;;  %v771_v7 = vmax.f32 %v755_v49, 0.0  ;;  %v902_v6 = vsub.f32 %v886_v30, %v1987_v9 }
 0x19b   : > { %vm1032_vm12 = vmand %vm984_vm10, %vm1016_vm11  ;;  %v831_v40 = vpop.permute.xlu1 %830  ;;  %v905_v38 = vsub.f32 %v889_v62, %v789_v39 }
 0x19c   : > { %v1292_v27 = vsel %vm1032_vm12, 1.0, %v1518_v55  ;;  %v846_v37 = vpop.permute.xlu0 %845  ;;  %v888_v11 = vadd.f32 %v2080_v42, %v831_v40  ;;  %v787_v48 = vmul.f32 %v771_v7, %v739_v51  ;;  %v1002_v12 = vmul.f32 0.55, %v902_v6 }
 0x19d   : > { %1080 = vst [vmem:[#allocation2 + $0x10] sm:$0xff] %v1292_v27  ;;  %v891_v28 = vadd.f32 %v2080_v42, %v846_v37  ;;  %v1005_v21 = vmul.f32 0.55, %v905_v38 }
 0x19e   : > { %v903_v46 = vsub.f32 %v887_v13, %v787_v48  ;;  %v904_v0 = vsub.f32 %v888_v11, %v1995_v10  ;;  %vm1018_vm14 = vcmp.ge.f32.partialorder %v1987_v9, %v1002_v12 }
 0x19f   : > { %v841_v43 = vpop.permute.xlu1 %840  ;;  %v907_v59 = vsub.f32 %v891_v28, %v2051_v19  ;;  %vm1021_vm7 = vcmp.ge.f32.partialorder %v789_v39, %v1005_v21 }
 0x1a0   : > { %v856_v32 = vpop.permute.xlu0 %855  ;;  %v890_v36 = vadd.f32 %v2080_v42, %v841_v43  ;;  %v1003_v56 = vmul.f32 0.55, %v903_v46  ;;  %v1004_v17 = vmul.f32 0.55, %v904_v0 }
 0x1a1   : > { %v893_v37 = vadd.f32 %v2080_v42, %v856_v32  ;;  %v1007_v47 = vmul.f32 0.55, %v907_v59 }
 0x1a2   : > { %v906_v50 = vsub.f32 %v890_v36, %v2003_v15  ;;  %vm1019_vm2 = vcmp.ge.f32.partialorder %v787_v48, %v1003_v56  ;;  %vm1020_vm5 = vcmp.ge.f32.partialorder %v1995_v10, %v1004_v17 }
 0x1a3   : > { %v851_v57 = vpop.permute.xlu1 %850  ;;  %v909_v49 = vsub.f32 %v893_v37, %v2060_v58 }
 0x1a4   : > { %v866_v60 = vpop.permute.xlu0 %865  ;;  %v892_v52 = vadd.f32 %v2080_v42, %v851_v57  ;;  %v1006_v27 = vmul.f32 0.55, %v906_v50 }
 0x1a5   : > { %v895_v43 = vadd.f32 %v2080_v42, %v866_v60  ;;  %v1009_v8 = vmul.f32 0.55, %v909_v49 }
 0x1a6   : > { %v908_v44 = vsub.f32 %v892_v52, %v2010_v14  ;;  %vm1022_vm9 = vcmp.ge.f32.partialorder %v2003_v15, %v1006_v27 }
 0x1a7   : > { %v861_v31 = vpop.permute.xlu1 %860  ;;  %v911_v15 = vsub.f32 %v895_v43, %v2070_v34 }
 0x1a8   : > { %v876_v4 = vpop.permute.xlu0 %875  ;;  %v894_v23 = vadd.f32 %v2080_v42, %v861_v31  ;;  %v1008_v10 = vmul.f32 0.55, %v908_v44 }
 0x1a9   : > { %v897_v22 = vadd.f32 %v2080_v42, %v876_v4 }
 0x1aa   : > { %v910_v26 = vsub.f32 %v894_v23, %v2017_v41 }
 0x1ab   : > { %v871_v33 = vpop.permute.xlu1 %870  ;;  %v913_v51 = vsub.f32 %v897_v22, %v2074_v18 }
 0x1ac   : > { %v896_v24 = vadd.f32 %v2080_v42, %v871_v33  ;;  %v1010_v7 = vmul.f32 0.55, %v910_v26  ;;  %v1011_v42 = vmul.f32 0.55, %v911_v15 }
 0x1ad   : > { %v932_v3 = vpop.permute.xlu0 %931  ;;  %v1013_v48 = vmul.f32 0.55, %v913_v51 }
 0x1ae   : > { %vm986_vm13 = vcmp.eq.f32.partialorder %v932_v3, %v2099_v54  ;;  %v912_v57 = vsub.f32 %v896_v24, %v2021_v25 }
 0x1af   : > { %vm1034_vm15 = vmand %vm986_vm13, %vm1018_vm14  ;;  %vm1023_vm13 = vcmp.ge.f32.partialorder %v2051_v19, %v1007_v47 }
 0x1b0   : > { %v1294_v5 = vsel %vm1034_vm15, 1.0, %v1518_v55  ;;  %v936_v40 = vpop.permute.xlu1 %935  ;;  %v1012_v20 = vmul.f32 0.55, %v912_v57 }
 0x1b1   : > { %1082 = vst [vmem:[#allocation2 + $0x20] sm:$0xff] %v1294_v5  ;;  %vm987_vm1 = vcmp.eq.f32.partialorder %v936_v40, %v2099_v54  ;;  %v940_v1 = vpop.permute.xlu0 %939 }
 0x1b2   : > { %vm1035_vm3 = vmand %vm987_vm1, %vm1019_vm2  ;;  %vm988_vm4 = vcmp.eq.f32.partialorder %v940_v1, %v2099_v54  ;;  %vm1024_vm2 = vcmp.ge.f32.partialorder %v2010_v14, %v1008_v10 }
 0x1b3   : > { %v1295_v9 = vsel %vm1035_vm3, 1.0, %v1518_v55  ;;  %vm1036_vm6 = vmand %vm988_vm4, %vm1020_vm5  ;;  %vm1025_vm5 = vcmp.ge.f32.partialorder %v2060_v58, %v1009_v8 }
 0x1b4   : > { %1083 = vst [vmem:[#allocation2 + $0x28] sm:$0xff] %v1295_v9  ;;  %v1296_v35 = vsel %vm1036_vm6, 1.0, %v1518_v55  ;;  %v944_v45 = vpop.permute.xlu1 %943 }
 0x1b5   : > { %1084 = vst [vmem:[#allocation2 + $0x30] sm:$0xff] %v1296_v35  ;;  %vm989_vm8 = vcmp.eq.f32.partialorder %v944_v45, %v2099_v54  ;;  %v948_v16 = vpop.permute.xlu0 %947 }
 0x1b6   : > { %vm1037_vm10 = vmand %vm989_vm8, %vm1021_vm7  ;;  %vm990_vm11 = vcmp.eq.f32.partialorder %v948_v16, %v2099_v54  ;;  %vm1026_vm8 = vcmp.ge.f32.partialorder %v2017_v41, %v1010_v7 }
 0x1b7   : > { %v1297_v32 = vsel %vm1037_vm10, 1.0, %v1518_v55  ;;  %vm1038_vm12 = vmand %vm990_vm11, %vm1022_vm9  ;;  %vm1027_vm11 = vcmp.ge.f32.partialorder %v2070_v34, %v1011_v42 }
 0x1b8   : > { %1085 = vst [vmem:[#allocation2 + $0x38] sm:$0xff] %v1297_v32  ;;  %v1298_v61 = vsel %vm1038_vm12, 1.0, %v1518_v55  ;;  %v952_v53 = vpop.permute.xlu1 %951 }
 0x1b9   : > { %1086 = vst [vmem:[#allocation2 + $0x40] sm:$0xff] %v1298_v61  ;;  %vm991_vm14 = vcmp.eq.f32.partialorder %v952_v53, %v2099_v54  ;;  %v956_v30 = vpop.permute.xlu0 %955 }
 0x1ba   : > { %vm1039_vm15 = vmand %vm991_vm14, %vm1023_vm13  ;;  %vm992_vm1 = vcmp.eq.f32.partialorder %v956_v30, %v2099_v54  ;;  %vm1028_vm14 = vcmp.ge.f32.partialorder %v2021_v25, %v1012_v20  ;;  %v1503_v25 = vmov 0.0  }
 0x1bb   : > { %v1299_v63 = vsel %vm1039_vm15, 1.0, %v1518_v55  ;;  %vm1040_vm3 = vmand %vm992_vm1, %vm1024_vm2  ;;  %vm1029_vm2 = vcmp.ge.f32.partialorder %v2074_v18, %v1013_v48 }
 0x1bc   : > { %1087 = vst [vmem:[#allocation2 + $0x48] sm:$0xff] %v1299_v63  ;;  %v1300_v19 = vsel %vm1040_vm3, 1.0, %v1518_v55  ;;  %v960_v60 = vpop.permute.xlu1 %959 }
 0x1bd   : > { %1088 = vst [vmem:[#allocation2 + $0x50] sm:$0xff] %v1300_v19  ;;  %vm993_vm4 = vcmp.eq.f32.partialorder %v960_v60, %v2099_v54  ;;  %v964_v13 = vpop.permute.xlu0 %963 }
 0x1be   : > { %vm1041_vm6 = vmand %vm993_vm4, %vm1025_vm5  ;;  %vm994_vm7 = vcmp.eq.f32.partialorder %v964_v13, %v2099_v54 }
 0x1bf   : > { %v1301_v14 = vsel %vm1041_vm6, 1.0, %v1518_v55  ;;  %vm1042_vm9 = vmand %vm994_vm7, %vm1026_vm8 }
 0x1c0   : > { %1089 = vst [vmem:[#allocation2 + $0x58] sm:$0xff] %v1301_v14  ;;  %v1302_v6 = vsel %vm1042_vm9, 1.0, %v1518_v55  ;;  %v968_v11 = vpop.permute.xlu1 %967 }
 0x1c1   : > { %1090 = vst [vmem:[#allocation2 + $0x60] sm:$0xff] %v1302_v6  ;;  %vm995_vm10 = vcmp.eq.f32.partialorder %v968_v11, %v2099_v54  ;;  %v972_v58 = vpop.permute.xlu0 %971 }
 0x1c2   : > { %vm1043_vm12 = vmand %vm995_vm10, %vm1027_vm11  ;;  %vm996_vm13 = vcmp.eq.f32.partialorder %v972_v58, %v2099_v54 }
 0x1c3   : > { %v1303_v41 = vsel %vm1043_vm12, 1.0, %v1518_v55  ;;  %vm1044_vm15 = vmand %vm996_vm13, %vm1028_vm14 }
 0x1c4   : > { %1091 = vst [vmem:[#allocation2 + $0x68] sm:$0xff] %v1303_v41  ;;  %v1304_v31 = vsel %vm1044_vm15, 1.0, %v1518_v55  ;;  %v976_v29 = vpop.permute.xlu1 %975 }
 0x1c5   : > { %1092 = vst [vmem:[#allocation2 + $0x70] sm:$0xff] %v1304_v31  ;;  %vm997_vm1 = vcmp.eq.f32.partialorder %v976_v29, %v2099_v54 }
 0x1c6   : > { %vm1045_vm3 = vmand %vm997_vm1, %vm1029_vm2 }
 0x1c7   : > { %v1305_v34 = vsel %vm1045_vm3, 1.0, %v1518_v55 }
 0x1c8   : > { %1093 = vst [vmem:[#allocation2 + $0x78] sm:$0xff] %v1305_v34 }
 0x1c9 LB: >> { %s1103_s19 = scalar_lea.vmem [#allocation2], %s1509_s17  ;;  %v1519_v54 = vmov 0   ;;  %vm1105_vm5 = vcmp.gt.f32.partialorder %v1505_v25, 0.5  ;;  %vm1112_vm7 = vcmask 1047559   ;;  %v1520_v4 = vmov 0.0   ;;  %v2315_v17 = vld [vmem:[#allocation9_spill] sm:$0xff]  ;;  %s1509_s17 = sphi %s2192_s17, %s1101_s17   ;;  %v1505_v25 = vphi %v1503_v25, %v1504_v25  }
 0x1ca   : >> { %v1131_v50 = vstv %s1509_s17  ;;  %s1101_s17 = sadd.s32 1, %s1509_s17  }
 0x1cb   : >> { %vm1132_vm10 = vcmp.eq.s32.totalorder %v2315_v17, %v1131_v50  ;;  %p1098_p12 = scmp.ge.s32.totalorder %s1101_s17, 128  }
 0x1cc   : > { %s1134_s25 = scvt.s32.f32 (%p1098_p12), %s1564_s16  ;;  %v1137_v59 = vrot.slane (%p1098_p12), %v1604_v2, 7  ;;  %vm1139_vm12 = vcmask (%p1098_p12), 1040384   ;;  %s1309_s26 = sshll.u32 (%p1098_p12), %s1564_s16, 7 }
 0x1cd   : > { %s1161_s27 = sshll.u32 (%p1098_p12), %s2189_s10, 4  ;;  %s2214_s30 = scalar_lea.hbm (%p1098_p12), %s2289_s2, %s1309_s26  ;;  %s2216_s27 = int_to_ptr.vmem [resolvable:$true] %s1161_s27 }
 0x1ce   : > { %v1135_v5 = vstv (%p1098_p12), %s1134_s25  ;;  %s1310_s4 = sshll.u32 (%p1098_p12), %s1564_s16, 4  ;;  %s2227_s9 = sshll.u32 (%p1098_p12), %s186_s11, 4  ;;  %s1175_s9 = int_to_ptr.vmem [resolvable:$true] %s2227_s9 }
 0x1cf   : >> { %v1104_v18 = vld [vmem:[%s1103_s19] sm:$0x1]  ;;  %v1140_v40 = vsel (%p1098_p12), %vm1139_vm12, %v1135_v5, %v1137_v59  ;;  %s2223_s7 = scalar_lea.hbm (%p1098_p12), %s2290_s3, %s1310_s4  ;;  %s1144_s17 = scalar_lea.sflag (%p1098_p12), [#allocation4], %s1978_s8 }
 0x1d0   : >> { %vm1106_vm4 = vcmp.gt.f32.partialorder %v1104_v18, 0.5  ;;  %1141 = vst [vmem:[%s2189_s10] sm:$0xff] (%p1098_p12), %v1140_v40  ;;  %s1399_s19 = scalar_lea.vmem (%p1098_p12), %s2216_s27, 128 }
 0x1d1   : >> { %v1107_v55 = vsel %vm1106_vm4, 1, %v1519_v54  ;;  %p1400_p13 = scmp.ne.s32.totalorder (%p1098_p12), %s2216_s27, %s1399_s19 }
 0x1d2   : >> { %v1108_v62 = vrot.slane %v1107_v55, 1 }
 0x1d3   : > { %p1401_p0 = pnand (%p1098_p12), %p1400_p13, %p1581_p5 }
 0x1d4   : >> { %vm1109_vm6 = vcmp.ne.s32.totalorder %v1108_v62, 0 }
 0x1d5   : >> { %vm1110_vm8 = vmand %vm1105_vm5, %vm1109_vm6  ;;  %p1402_p1 = pneg (%p1098_p12), %p1401_p0 }
 0x1d6   : >> { %v1111_v46 = vsel %vm1110_vm8, 1.0, %v1520_v4 }
 0x1d7   : >> { %v1113_v36 = vsel %vm1112_vm7, %v1111_v46, -inf }
 0x1d8   : >> { %1114 = vmax.xlane.f32.xlu0 %v1113_v36 }
 0x265   : >> { %v1115_v12 = vpop.xlane.xlu0 %1114 }
 0x266   : >> { %v1116_v39 = vrot.slane %v1115_v12, 4 }
 0x268   : >> { %v1117_v0 = vmax.f32 %v1115_v12, %v1116_v39 }
 0x26a   : >> { %v1118_v33 = vrot.slane %v1117_v0, 2 }
 0x26c   : >> { %v1119_v38 = vmax.f32 %v1117_v0, %v1118_v33 }
 0x26e   : >> { %v1120_v28 = vrot.slane %v1119_v38, 1 }
 0x270   : >> { %v1121_v56 = vmax.f32 %v1119_v38, %v1120_v28 }
 0x272   : >> { %1314 = vpush %v1121_v56 }
 0x2a3   : >> { %s1315_s20 = spop %1314 }
 0x2a4   : >> { %p1123_p11 = scmp.gt.f32.partialorder %s1315_s20, 0.0  ;;  %s1521_s20 = smov (%p1098_p12), [#allocation3]  }
 0x2a6   : >> { %s1306_s24 = scalar_select %p1123_p11, 0, 1 }
 0x2a7   : > { %1100 = sbr.rel (!%p1098_p12) target bundleno = 457 (0x1c9), region = 91 }
 0x2a8   : >> { %v1126_v3 = vstv %s1306_s24  ;;  %s1403_s24 = sshll.u32 (%p1098_p12), %s1521_s20, 4  ;;  %s1404_s24 = int_to_ptr.vmem [resolvable:$false] %s1403_s24 }
 0x2a9   : >> { %vm1127_vm9 = vcmp.eq.s32.totalorder %v1126_v3, 1  ;;  %s1405_s25 = scalar_lea.vmem (%p1098_p12), %s1404_s24, 256  ;;  %p1406_p2 = scmp.lt.s32.totalorder (%p1098_p12), %s2216_s27, %s1404_s24 }
 0x2aa   : >> { %vm1128_vm11 = vmand %vm197_vm0, %vm1127_vm9  ;;  %p1407_p3 = scmp.lt.s32.totalorder (%p1098_p12), %s1405_s25, %s1399_s19 }
 0x2ab   : >> { %v1307_v52 = vsel %vm1128_vm11, 1.0, %v1520_v4 }
 0x2ac   : >> { %v1133_v21 = vsel %vm1132_vm10, %v1307_v52, %v1505_v25   ;;  %p1408_p4 = por (%p1098_p12), %p1407_p3, %p1406_p2 }
 0x2ad   : >> { %v1504_v25 = vmov %v1133_v21   ;;  %1142 = vst [vmem:[%s186_s11 - $0x7] sm:$0x80] (%p1098_p12), %v1133_v21 }
 0x2ae   : > { %p1409_p7 = pnand %p1408_p4, %p1402_p1 }
 0x2b0   : > { %1412 = shalt.err (!%p1409_p7)
}
 0x2b1   : > { %s1413_s16 = scalar_lea.hbm %s2214_s30, 128  ;;  %s1417_s26 = scalar_lea.hbm %s2289_s2, 256 }
 0x2b2   : > { %p1414_p8 = scmp.ne.s32.totalorder %s2214_s30, %s1413_s16  ;;  %p1418_p11 = scmp.lt.u32.totalorder %s2214_s30, %s2289_s2 }
 0x2b3   : > { %p1419_p12 = scmp.lt.u32.totalorder %s1417_s26, %s1413_s16  ;;  %p1421_p0 = scmp.lt.u32.totalorder %s1413_s16, %s2214_s30 }
 0x2b4   : > { %p1415_p9 = pnand %p1414_p8, %p1581_p5 }
 0x2b5   : > { %p1420_p13 = por %p1419_p12, %p1418_p11 }
 0x2b6   : > { %p1416_p10 = pneg %p1415_p9 }
 0x2b7   : > { %p1422_p1 = por %p1421_p0, %p1420_p13 }
 0x2b9   : > { %p1423_p2 = pnand %p1422_p1, %p1416_p10 }
 0x2bb   : > { %1426 = shalt.err (!%p1423_p2)
}
 0x2bc   : > { %1316 = dma.vmem_to_hbm [thread:$0]  (%p1581_p5), %s2216_s27, 128, %s2214_s30, %s1144_s17  }
 0x2bd   : > { %s1149_s4 = scalar_lea.sflag [#allocation6], %s1978_s8  ;;  %s1427_s5 = scalar_lea.vmem %s1175_s9, 16 }
 0x2be   : > { %p1428_p3 = scmp.ne.s32.totalorder %s1175_s9, %s1427_s5  ;;  %s1522_s6 = smov [#allocation5]  }
 0x2bf   : > { %s1431_s19 = sshll.u32 %s1522_s6, 4  ;;  %s1432_s19 = int_to_ptr.vmem [resolvable:$false] %s1431_s19 }
 0x2c0   : > { %p1429_p4 = pnand %p1428_p3, %p1581_p5  ;;  %s1433_s20 = scalar_lea.vmem %s1432_s19, 32 }
 0x2c1   : > { %p1434_p8 = scmp.lt.s32.totalorder %s1175_s9, %s1432_s19  ;;  %p1435_p9 = scmp.lt.s32.totalorder %s1433_s20, %s1427_s5 }
 0x2c2   : > { %p1430_p7 = pneg %p1429_p4 }
 0x2c3   : > { %p1436_p10 = por %p1435_p9, %p1434_p8 }
 0x2c5   : > { %p1437_p11 = pnand %p1436_p10, %p1430_p7 }
 0x2c7   : > { %1440 = shalt.err (!%p1437_p11)
}
 0x2c8   : > { %s1441_s8 = scalar_lea.hbm %s2223_s7, 16  ;;  %s1445_s17 = scalar_lea.hbm %s2290_s3, 32 }
 0x2c9   : > { %p1442_p12 = scmp.ne.s32.totalorder %s2223_s7, %s1441_s8  ;;  %p1446_p1 = scmp.lt.u32.totalorder %s2223_s7, %s2290_s3 }
 0x2ca   : > { %p1447_p2 = scmp.lt.u32.totalorder %s1445_s17, %s1441_s8  ;;  %p1449_p4 = scmp.lt.u32.totalorder %s1441_s8, %s2223_s7 }
 0x2cb   : > { %p1443_p13 = pnand %p1442_p12, %p1581_p5 }
 0x2cc   : > { %p1448_p3 = por %p1447_p2, %p1446_p1 }
 0x2cd   : > { %p1444_p0 = pneg %p1443_p13 }
 0x2ce   : > { %p1450_p7 = por %p1449_p4, %p1448_p3 }
 0x2d0   : > { %p1451_p8 = pnand %p1450_p7, %p1444_p0 }
 0x2d2   : > { %1454 = shalt.err (!%p1451_p8)
}
 0x2d3   : > { %1317 = dma.vmem_to_hbm [thread:$0]  (%p1581_p5), %s1175_s9, 16, %s2223_s7, %s1149_s4  }
 0x2d4 PF: > { %p1327_p9 = scmp.ge.s32.totalorder %s1501_s15, 2  ;;  %s1186_s16 = sand.u32 1, %s1489_s12  }
 0x2d5   : > { %s1187_s10 = scalar_lea.sflag [#allocation4], %s1186_s16 }
 0x2d6   : > { %p1321_p10 = pnand %p1327_p9, %p1585_p6 }
 0x2d8   : > { %1480 = dma.done.wait (!%p1321_p10), %s1187_s10, 128  }
 0x2d9   : > { %1482 = vsyncadd (!%p1321_p10), %s1187_s10, 4294967168  ;;  %s1196_s11 = scalar_lea.sflag [#allocation6], %s1186_s16 }
 0x2da   : > { %1484 = dma.done.wait (!%p1321_p10), %s1196_s11, 16  }
 0x2db   : > { %1486 = vsyncadd (!%p1321_p10), %s1196_s11, 4294967280  ;;  %p17_p5 = scmp.ge.s32.totalorder %s1568_s18, 4   ;;  %s2316_s12 = smov %s1493_s13 }
 0x2dc   : > { %s2317_s13 = smov %s1497_s14  ;;  %s2318_s14 = smov %s1579_s21 }
 0x2dd   : > { %s2319_s15 = smov %s1568_s18  ;;  %19 = sbr.rel (!%p17_p5) target bundleno = 5 (0x5), region = 102 }
 0x2e4   :  { %1200 = vsyncpa [#allocation4], 1 }
 0x2e5   :  { %1202 = vsyncpa [#allocation4 + $0x1], 1 }
 0x2e6   :  { %1203 = vsyncpa [#allocation6], 1 }
 0x2e7   :  { %1205 = vsyncpa [#allocation6 + $0x1], 1 }

</bundles_post_ra>
